<compile_context>
chip_gen: v5e
topology: v5e:2x2
jax: 0.10.0
libtpu: 0.0.40
codegen_flags: <defaults>
</compile_context>

<pallas_src>
import functools

import jax
import jax.numpy as jnp
from jax.experimental import pallas as pl
from jax.experimental.pallas import tpu as pltpu

NUM_LAYERS = 4           # RealNVP: 4 Affine_Coupling layers, mask_reverse = [True, False, True, False]
_LANE = 128              # lane width / minimum batch-tile granule
_VMEM_BUDGET = 48 * 1024 * 1024   # safe on v7x (64 MiB physical); well under v5e/v6e's 128 MiB


def _leaky_relu(x):
    # torch.nn.LeakyReLU default negative_slope = 0.01; max() form = 2 VPU ops (no select).
    return jnp.maximum(x, 0.01 * x)


def _cdiv(a, b):
    return (a + b - 1) // b


def _round_up(x, m):
    return ((x + m - 1) // m) * m


def _block_diag(a, b):
    ra, ca = a.shape
    rb, cb = b.shape
    top = jnp.concatenate([a, jnp.zeros((ra, cb), a.dtype)], axis=1)
    bot = jnp.concatenate([jnp.zeros((rb, ca), b.dtype), b], axis=1)
    return jnp.concatenate([top, bot], axis=0)


def _padded_bytes(shape, itemsize):
    """Rough VMEM footprint of one buffer of `shape` ((8,128)-padded last two dims)."""
    lead = 1
    for d in shape[:-2]:
        lead *= int(d)
    sub = _round_up(int(shape[-2]), 8)
    lane = _round_up(int(shape[-1]), _LANE)
    return lead * sub * lane * int(itemsize)


def _est_vmem_bytes(TB, D, kparams):
    """Conservative VMEM estimate: double-buffered blocks + weights + intermediate headroom."""
    H2 = kparams["w1"].shape[1]
    est = 2 * (_padded_bytes((TB, D), 4)     # z block
               + _padded_bytes((D, TB), 4)   # y block
               + _padded_bytes((1, TB), 4))  # logdet block
    for name in ("eye", "w1", "b1", "w2", "b2", "wo", "bo", "scale", "minv"):
        a = kparams[name]
        est += 2 * _padded_bytes(a.shape, jnp.dtype(a.dtype).itemsize)
    # headroom for in-kernel intermediates (h, st, exp/tanh temporaries, spills)
    est += 6 * _padded_bytes((H2, TB), 4)
    return est


# ----------------------------------- Pallas kernel -----------------------------------

def realnvp_fwd_kernel(
    z_ref,                      # (TB, D)  f32   batch-major activation tile (as supplied by caller)
    eye_ref,                    # (D, D)   f32   identity, used for the in-kernel MXU transpose
    w1_ref, b1_ref,             # (L, 2H, D) mm-dtype / (L, 2H, 1) f32   fused fc1_{s,t}, mask-folded
    w2_ref, b2_ref,             # fused: (L, 2H, 2H)  else (L, 2, H, H)  mm-dtype / (L, 2H, 1) f32
    wo_ref, bo_ref,             # fused: (L, 2D, 2H)  else (L, 2, D, H)  mm-dtype / (L, 2D, 1) f32
    scale_ref, minv_ref,        # (D, 1) f32
    y_ref, logdet_ref,          # outputs: (D, TB) out_dtype, (1, TB) f32  (lane-dense stores)
    *, tanh_output: bool, fused_st: bool,
):
    TB, D = z_ref.shape
    H2 = w1_ref.shape[1]
    H = H2 // 2
    mdt = w1_ref.dtype          # matmul operand dtype (bf16 by default; MXU-native on all gens)

    # Batch-major -> feature-major transpose done in-kernel via an identity matmul
    # (same Q @ K^T contraction pattern used by flash-attention kernels; exact in f32 at
    # HIGHEST precision, and the MXU has plenty of slack in this kernel).
    y = jax.lax.dot_general(
        eye_ref[...], z_ref[...].astype(jnp.float32),
        (((1,), (1,)), ((), ())),
        precision=jax.lax.Precision.HIGHEST,
        preferred_element_type=jnp.float32)                                   # (D, TB)

    logdet = jnp.zeros((1, TB), jnp.float32)

    # Static unroll over the 4 coupling layers.  Masks are folded into the packed weights:
    #   * w1 columns with mask==1 are zero   -> feeding y IS feeding y*(1-mask)
    #   * wo rows / bo entries with mask==0 are zero -> tanh(0)=0, so s,t come out pre-masked
    for i in range(NUM_LAYERS):
        h = _leaky_relu(
            jnp.dot(w1_ref[i], y.astype(mdt),
                    preferred_element_type=jnp.float32) + b1_ref[i])          # (2H, TB)
        if fused_st:
            # Block-diagonal fused s/t branches: 3 dots per layer (only when 2H fits one
            # MXU contraction tile, otherwise the zero blocks would double MXU FLOPs).
            h = _leaky_relu(
                jnp.dot(w2_ref[i], h.astype(mdt),
                        preferred_element_type=jnp.float32) + b2_ref[i])      # (2H, TB)
            st = jnp.tanh(
                jnp.dot(wo_ref[i], h.astype(mdt),
                        preferred_element_type=jnp.float32) + bo_ref[i])      # (2D, TB)
            s, t = st[:D], st[D:]
        else:
            # Separate s / t branches (wide hidden dims): no wasted zero-block FLOPs.
            hs = _leaky_relu(
                jnp.dot(w2_ref[i, 0], h[:H].astype(mdt),
                        preferred_element_type=jnp.float32) + b2_ref[i, :H])  # (H, TB)
            ht = _leaky_relu(
                jnp.dot(w2_ref[i, 1], h[H:].astype(mdt),
                        preferred_element_type=jnp.float32) + b2_ref[i, H:])  # (H, TB)
            s = jnp.tanh(
                jnp.dot(wo_ref[i, 0], hs.astype(mdt),
                        preferred_element_type=jnp.float32) + bo_ref[i, :D])  # (D, TB)
            t = jnp.tanh(
                jnp.dot(wo_ref[i, 1], ht.astype(mdt),
                        preferred_element_type=jnp.float32) + bo_ref[i, D:])  # (D, TB)

        y = y * jnp.exp(s) + t
        logdet = logdet + jnp.sum(s, axis=0, keepdims=True)                   # (1, TB)

    if tanh_output:
        # Matches the torch source exactly: log(2) - y - softplus(-2y).
        log_one_minus_tanhy_sq = jnp.log(2.0) - y - jax.nn.softplus(-2.0 * y)
        y = jnp.tanh(y)
        logdet = logdet + jnp.sum(log_one_minus_tanhy_sq, axis=0, keepdims=True)

    # y = (y + 1) * scale + min_val   (per-feature scale/min broadcast over lanes)
    y = (y + 1.0) * scale_ref[...] + minv_ref[...]

    y_ref[...] = y.astype(y_ref.dtype)
    logdet_ref[...] = logdet


# ----------------------------------- wrapper -----------------------------------

def realnvp_forward(z, kparams, *, tanh_output=False, block_batch=4096,
                    out_dtype=jnp.float32, feature_major_output=False):
    """z: (B, D) float32 (batch-major, as the torch module takes it).
    kparams: output of pack_realnvp_params.
    Returns (y (B, D), logdet (B,)); with feature_major_output=True returns y as (D, B)
    (lane-dense, no final transpose) for callers that can consume it directly."""
    B, D = z.shape
    fused_st = bool(kparams["fused_st"])

    # --- batch tiling: big tiles amortize the ~0.35us/grid-step overhead that dominates these
    # tiny-D matmuls; keep >=2 tiles when B allows so "parallel" can shard over v7x's 2 TCs,
    # and pick TB to minimize pad waste rather than rounding B up to a fixed tile.
    ntiles = max(_cdiv(B, block_batch), 2 if B >= 2 * _LANE else 1)
    TB = _round_up(_cdiv(B, ntiles), _LANE)
    while TB > _LANE and _est_vmem_bytes(TB, D, kparams) > _VMEM_BUDGET:
        TB -= _LANE                                   # shrink if we'd blow the v7x VMEM budget
    ntiles = _cdiv(B, TB)
    B_pad = ntiles * TB

    zf = z.astype(jnp.float32)
    if B_pad != B:
        zf = jnp.pad(zf, ((0, B_pad - B), (0, 0)))    # padded columns are discarded at the end

    vmem_limit = int(min(_VMEM_BUDGET,
                         max(_est_vmem_bytes(TB, D, kparams), 32 * 1024 * 1024)))

    def full_spec(arr):
        return pl.BlockSpec(arr.shape, lambda j, _nd=arr.ndim: (0,) * _nd)

    y_t, logdet_t = pl.pallas_call(
        functools.partial(realnvp_fwd_kernel, tanh_output=tanh_output, fused_st=fused_st),
        grid=(ntiles,),
        in_specs=[
            pl.BlockSpec((TB, D), lambda j: (j, 0)),   # z tile, batch-major (pipelined over batch)
            full_spec(kparams["eye"]),
            full_spec(kparams["w1"]), full_spec(kparams["b1"]),
            full_spec(kparams["w2"]), full_spec(kparams["b2"]),
            full_spec(kparams["wo"]), full_spec(kparams["bo"]),
            full_spec(kparams["scale"]), full_spec(kparams["minv"]),
        ],
        out_specs=(
            pl.BlockSpec((D, TB), lambda j: (0, j)),   # y, feature-major (lane-dense store)
            pl.BlockSpec((1, TB), lambda j: (0, j)),   # logdet as a lane-dense row
        ),
        out_shape=(
            jax.ShapeDtypeStruct((D, B_pad), out_dtype),
            jax.ShapeDtypeStruct((1, B_pad), jnp.float32),
        ),
        compiler_params=pltpu.CompilerParams(
            dimension_semantics=("parallel",),          # shard batch tiles across TCs (v7x)
            vmem_limit_bytes=vmem_limit,
        ),
    )(
        zf, kparams["eye"],
        kparams["w1"], kparams["b1"], kparams["w2"], kparams["b2"],
        kparams["wo"], kparams["bo"], kparams["scale"], kparams["minv"],
    )

    logdet = logdet_t[0, :B]
    if feature_major_output:
        return y_t[:, :B], logdet
    return y_t[:, :B].T, logdet


# ------------------------- parameter construction (plain JAX glue) -------------------------

def _linear_init(key, fan_in, fan_out):
    # torch.nn.Linear default init: U(-1/sqrt(fan_in), 1/sqrt(fan_in)); weight stored (out, in).
    kw, kb = jax.random.split(key)
    bound = 1.0 / jnp.sqrt(fan_in)
    w = jax.random.uniform(kw, (fan_out, fan_in), jnp.float32, -bound, bound)
    b = jax.random.uniform(kb, (fan_out,), jnp.float32, -bound, bound)
    return w, b


def init_realnvp_params(key, in_dim, hidden_dim, min_val=None, max_val=None):
    """Raw (torch-layout) per-layer parameters; used by the reference and by pack_realnvp_params."""
    keys = jax.random.split(key, NUM_LAYERS * 6)
    layers = []
    for i in range(NUM_LAYERS):
        k = keys[6 * i:6 * (i + 1)]
        w1s, b1s = _linear_init(k[0], in_dim, hidden_dim)
        w2s, b2s = _linear_init(k[1], hidden_dim, hidden_dim)
        wos, bos = _linear_init(k[2], hidden_dim, in_dim)
        w1t, b1t = _linear_init(k[3], in_dim, hidden_dim)
        w2t, b2t = _linear_init(k[4], hidden_dim, hidden_dim)
        wot, bot = _linear_init(k[5], hidden_dim, in_dim)
        layers.append(dict(w1s=w1s, b1s=b1s, w2s=w2s, b2s=b2s, wos=wos, bos=bos,
                           w1t=w1t, b1t=b1t, w2t=w2t, b2t=b2t, wot=wot, bot=bot))

    # checkerboard_mask1D; mask_reverse per layer = [True, False, True, False]
    checker = (jnp.arange(in_dim) % 2).astype(jnp.float32)
    masks = jnp.stack([1.0 - checker, checker], axis=0)       # (2, D): [0]=reversed, [1]=plain

    if max_val is None:
        min_v = jnp.zeros((in_dim,), jnp.float32)
        max_v = jnp.ones((in_dim,), jnp.float32)
    else:
        min_v = jnp.asarray(min_val, jnp.float32).reshape(in_dim)
        max_v = jnp.asarray(max_val, jnp.float32).reshape(in_dim)
    scale = (max_v - min_v) * 0.5

    return {"layers": layers, "masks": masks, "scale": scale, "min_val": min_v}


def pack_realnvp_params(params, matmul_dtype=jnp.bfloat16, fuse_st_max_width=128):
    """Pack raw params for the kernel.

    * Masks are folded into the weights (exact: mask is 0/1 and tanh(0)=0):
        w1 columns with mask==1 zeroed; wo rows AND bo entries with mask==0 zeroed.
    * s/t branches are fused block-diagonally only when 2*hidden <= fuse_st_max_width
      (conservative default 128 = v5e MXU contraction width; use 256 on v6e/v7x).
    """
    layers = params["layers"]
    H = layers[0]["w1s"].shape[0]
    D = layers[0]["w1s"].shape[1]
    fused_st = (2 * H) <= fuse_st_max_width

    w1, b1, w2, b2, wo, bo = [], [], [], [], [], []
    for i, L in enumerate(layers):
        mask = params["masks"][i % 2]                                 # (D,) 0/1
        keep_in = 1.0 - mask

        # fc1: concatenate s/t rows, zero the columns the coupling must not see.
        w1i = jnp.concatenate([L["w1s"], L["w1t"]], axis=0) * keep_in[None, :]    # (2H, D)
        b1i = jnp.concatenate([L["b1s"], L["b1t"]]).reshape(2 * H, 1)

        # fcout: zero rows + bias at mask==0 so tanh gives exactly 0 there (pre-masked s/t).
        wos = L["wos"] * mask[:, None]
        wot = L["wot"] * mask[:, None]
        bos = L["bos"] * mask
        bot = L["bot"] * mask

        if fused_st:
            w2i = _block_diag(L["w2s"], L["w2t"])                     # (2H, 2H)
            woi = _block_diag(wos, wot)                               # (2D, 2H)
        else:
            w2i = jnp.stack([L["w2s"], L["w2t"]])                     # (2, H, H)
            woi = jnp.stack([wos, wot])                               # (2, D, H)
        b2i = jnp.concatenate([L["b2s"], L["b2t"]]).reshape(2 * H, 1)
        boi = jnp.concatenate([bos, bot]).reshape(2 * D, 1)

        w1.append(w1i); b1.append(b1i); w2.append(w2i); b2.append(b2i)
        wo.append(woi); bo.append(boi)

    return {
        "w1": jnp.stack(w1).astype(matmul_dtype), "b1": jnp.stack(b1),
        "w2": jnp.stack(w2).astype(matmul_dtype), "b2": jnp.stack(b2),
        "wo": jnp.stack(wo).astype(matmul_dtype), "bo": jnp.stack(bo),
        "eye": jnp.eye(D, dtype=jnp.float32),
        "scale": params["scale"].reshape(D, 1),
        "minv": params["min_val"].reshape(D, 1),
        "fused_st": fused_st,
    }


# ------------------------- pure-JAX reference for verification -------------------------

def realnvp_forward_ref(z, params, *, tanh_output=False, matmul_dtype=jnp.float32):
    layers = params["layers"]
    y = z.astype(jnp.float32)
    logdet = jnp.zeros((z.shape[0],), jnp.float32)

    def lin(x, w, b):
        return jnp.dot(x.astype(matmul_dtype), w.T.astype(matmul_dtype),
                       preferred_element_type=jnp.float32) + b

    for i, L in enumerate(layers):
        mask = params["masks"][i % 2].reshape(1, -1)
        x_fixed = y * (1.0 - mask)
        h = jnp.where(lin(x_fixed, L["w1s"], L["b1s"]) >= 0,
                      lin(x_fixed, L["w1s"], L["b1s"]), 0.01 * lin(x_fixed, L["w1s"], L["b1s"]))
        h = jnp.maximum(lin(x_fixed, L["w1s"], L["b1s"]) * 0 + h, h)  # (keep h as computed)
        h = jnp.maximum(lin(x_fixed, L["w1s"], L["b1s"]), 0.01 * lin(x_fixed, L["w1s"], L["b1s"]))
        h = jnp.maximum(lin(h, L["w2s"], L["b2s"]), 0.01 * lin(h, L["w2s"], L["b2s"]))
        s = jnp.tanh(lin(h, L["wos"], L["bos"])) * mask
        g = jnp.maximum(lin(x_fixed, L["w1t"], L["b1t"]), 0.01 * lin(x_fixed, L["w1t"], L["b1t"]))
        g = jnp.maximum(lin(g, L["w2t"], L["b2t"]), 0.01 * lin(g, L["w2t"], L["b2t"]))
        t = jnp.tanh(lin(g, L["wot"], L["bot"])) * mask
        y = y * jnp.exp(s) + t
        logdet = logdet + jnp.sum(s, axis=-1)

    if tanh_output:
        lg = jnp.log(2.0) - y - jax.nn.softplus(-2.0 * y)   # verbatim torch expression
        y = jnp.tanh(y)
        logdet = logdet + jnp.sum(lg, axis=1)

    y = (y + 1.0) * params["scale"].reshape(1, -1) + params["min_val"].reshape(1, -1)
    return y, logdet


if __name__ == "__main__":
    B, D, H = 4, 8, 32   # batch, in_dim, hidden_dim
    key = jax.random.PRNGKey(0)
    k_params, k_in1, k_in2 = jax.random.split(key, 3)

    params = init_realnvp_params(k_params, D, H)            # default min/max -> scale=0.5, min=0
    z = jax.random.normal(k_in1, (B, D), jnp.float32)

    # f32 matmuls, fused s/t path (2H = 64 <= 128): tight check, both tanh_output modes.
    packed_f32 = pack_realnvp_params(params, matmul_dtype=jnp.float32)
    for tanh_out in (False, True):
        y, logdet = realnvp_forward(z, packed_f32, tanh_output=tanh_out)
        jax.block_until_ready((y, logdet))
        y_ref, logdet_ref = realnvp_forward_ref(z, params, tanh_output=tanh_out)
        assert jnp.allclose(y, y_ref, atol=5e-4, rtol=5e-4), f"y mismatch (f32 fused, tanh={tanh_out})"
        assert jnp.allclose(logdet, logdet_ref, atol=5e-4, rtol=5e-4), \
            f"logdet mismatch (f32 fused, tanh={tanh_out})"

    # Forced non-fused (separate s/t) path — the code path wide hidden dims take.
    packed_split = pack_realnvp_params(params, matmul_dtype=jnp.float32, fuse_st_max_width=0)
    y, logdet = realnvp_forward(z, packed_split, tanh_output=True)
    jax.block_until_ready((y, logdet))
    y_ref, logdet_ref = realnvp_forward_ref(z, params, tanh_output=True)
    assert jnp.allclose(y, y_ref, atol=5e-4, rtol=5e-4), "y mismatch (split s/t)"
    assert jnp.allclose(logdet, logdet_ref, atol=5e-4, rtol=5e-4), "logdet mismatch (split s/t)"

    # Multi-tile batch with padding: exercises grid > 1 and the pad-minimizing TB selection.
    B2 = 300
    z2 = jax.random.normal(k_in2, (B2, D), jnp.float32)
    y2, logdet2 = realnvp_forward(z2, packed_f32, tanh_output=True, block_batch=128)
    jax.block_until_ready((y2, logdet2))
    y2_ref, logdet2_ref = realnvp_forward_ref(z2, params, tanh_output=True)
    assert jnp.allclose(y2, y2_ref, atol=5e-4, rtol=5e-4), "y mismatch (multi-tile)"
    assert jnp.allclose(logdet2, logdet2_ref, atol=5e-4, rtol=5e-4), "logdet mismatch (multi-tile)"

    # bf16 MXU operands (default packing; MXU-native on v5e/v6e/v7x) vs a bf16-cast reference.
    packed_bf16 = pack_realnvp_params(params)                # matmul_dtype=jnp.bfloat16
    y, logdet = realnvp_forward(z, packed_bf16, tanh_output=False)
    jax.block_until_ready((y, logdet))
    y_ref, logdet_ref = realnvp_forward_ref(z, params, tanh_output=False,
                                            matmul_dtype=jnp.bfloat16)
    assert jnp.allclose(y, y_ref, atol=5e-2, rtol=5e-2), "y mismatch (bf16)"
    assert jnp.allclose(logdet, logdet_ref, atol=5e-2, rtol=5e-2), "logdet mismatch (bf16)"

    print("KERNEL_OK")
</pallas_src>

<mosaic_0001>
module attributes {stable_mosaic.version = 11 : i64} {
  func.func @realnvp_fwd_kernel(%arg0: i32, %arg1: memref<128x8xf32, #tpu.memory_space<vmem>>, %arg2: memref<8x8xf32, #tpu.memory_space<vmem>>, %arg3: memref<4x64x8xf32, #tpu.memory_space<vmem>>, %arg4: memref<4x64x1xf32, #tpu.memory_space<vmem>>, %arg5: memref<4x64x64xf32, #tpu.memory_space<vmem>>, %arg6: memref<4x64x1xf32, #tpu.memory_space<vmem>>, %arg7: memref<4x16x64xf32, #tpu.memory_space<vmem>>, %arg8: memref<4x16x1xf32, #tpu.memory_space<vmem>>, %arg9: memref<8x1xf32, #tpu.memory_space<vmem>>, %arg10: memref<8x1xf32, #tpu.memory_space<vmem>>, %arg11: memref<8x128xf32, #tpu.memory_space<vmem>>, %arg12: memref<1x128xf32, #tpu.memory_space<vmem>>) attributes {dimension_semantics = [#tpu.dimension_semantics<parallel>], iteration_bounds = array<i64: 1>, scalar_prefetch = 0 : i64, scratch_operands = 0 : i64, tpu.core_type = #tpu.core_type<tc>, window_params = [{transform_indices = @transform_0, window_bounds = array<i64: 128, 8>}, {pipeline_mode = #tpu.pipeline_mode<synchronous>, transform_indices = @transform_1, window_bounds = array<i64: 8, 8>}, {pipeline_mode = #tpu.pipeline_mode<synchronous>, transform_indices = @transform_2, window_bounds = array<i64: 4, 64, 8>}, {pipeline_mode = #tpu.pipeline_mode<synchronous>, transform_indices = @transform_3, window_bounds = array<i64: 4, 64, 1>}, {pipeline_mode = #tpu.pipeline_mode<synchronous>, transform_indices = @transform_4, window_bounds = array<i64: 4, 64, 64>}, {pipeline_mode = #tpu.pipeline_mode<synchronous>, transform_indices = @transform_5, window_bounds = array<i64: 4, 64, 1>}, {pipeline_mode = #tpu.pipeline_mode<synchronous>, transform_indices = @transform_6, window_bounds = array<i64: 4, 16, 64>}, {pipeline_mode = #tpu.pipeline_mode<synchronous>, transform_indices = @transform_7, window_bounds = array<i64: 4, 16, 1>}, {pipeline_mode = #tpu.pipeline_mode<synchronous>, transform_indices = @transform_8, window_bounds = array<i64: 8, 1>}, {pipeline_mode = #tpu.pipeline_mode<synchronous>, transform_indices = @transform_9, window_bounds = array<i64: 8, 1>}, {transform_indices = @transform_10, window_bounds = array<i64: 8, 128>}, {transform_indices = @transform_11, window_bounds = array<i64: 1, 128>}]} {
    %c0 = arith.constant 0 : index
    %c0_0 = arith.constant 0 : index
    %0 = vector.load %arg2[%c0, %c0_0] : memref<8x8xf32, #tpu.memory_space<vmem>>, vector<8x8xf32>
    %c0_1 = arith.constant 0 : index
    %c0_2 = arith.constant 0 : index
    %1 = vector.load %arg1[%c0_1, %c0_2] : memref<128x8xf32, #tpu.memory_space<vmem>>, vector<128x8xf32>
    %cst = arith.constant dense<0.000000e+00> : vector<8x128xf32>
    %2 = tpu.matmul %0, %1, %cst {dimension_numbers = #tpu.dot_dimension_numbers<[1], [1], [0], [0], [0, 0, 1, 0], [], []>, precision = #tpu.contract_precision<fp32>} : vector<8x8xf32>, vector<128x8xf32>, vector<8x128xf32> -> vector<8x128xf32>
    %cst_3 = arith.constant 0.000000e+00 : f32
    %3 = vector.broadcast %cst_3 : f32 to vector<1x128xf32>
    %c0_4 = arith.constant 0 : index
    %c0_5 = arith.constant 0 : index
    %c0_6 = arith.constant 0 : index
    %4 = vector.load %arg3[%c0_4, %c0_5, %c0_6] : memref<4x64x8xf32, #tpu.memory_space<vmem>>, vector<1x64x8xf32>
    %5 = vector.shape_cast %4 : vector<1x64x8xf32> to vector<64x8xf32>
    %cst_7 = arith.constant dense<0.000000e+00> : vector<64x128xf32>
    %6 = tpu.matmul %5, %2, %cst_7 {dimension_numbers = #tpu.dot_dimension_numbers<[1], [0], [0], [1], [0, 0, 1, 1], [], []>} : vector<64x8xf32>, vector<8x128xf32>, vector<64x128xf32> -> vector<64x128xf32>
    %c0_8 = arith.constant 0 : index
    %c0_9 = arith.constant 0 : index
    %c0_10 = arith.constant 0 : index
    %7 = vector.load %arg4[%c0_8, %c0_9, %c0_10] : memref<4x64x1xf32, #tpu.memory_space<vmem>>, vector<1x64x1xf32>
    %8 = vector.shape_cast %7 : vector<1x64x1xf32> to vector<64x1xf32>
    %9 = vector.broadcast %8 : vector<64x1xf32> to vector<64x128xf32>
    %10 = arith.addf %6, %9 : vector<64x128xf32>
    %cst_11 = arith.constant 0.00999999977 : f32
    %11 = vector.broadcast %cst_11 : f32 to vector<64x128xf32>
    %12 = arith.mulf %11, %10 : vector<64x128xf32>
    %13 = arith.maximumf %10, %12 : vector<64x128xf32>
    %c0_12 = arith.constant 0 : index
    %c0_13 = arith.constant 0 : index
    %c0_14 = arith.constant 0 : index
    %14 = vector.load %arg5[%c0_12, %c0_13, %c0_14] : memref<4x64x64xf32, #tpu.memory_space<vmem>>, vector<1x64x64xf32>
    %15 = vector.shape_cast %14 : vector<1x64x64xf32> to vector<64x64xf32>
    %cst_15 = arith.constant dense<0.000000e+00> : vector<64x128xf32>
    %16 = tpu.matmul %15, %13, %cst_15 {dimension_numbers = #tpu.dot_dimension_numbers<[1], [0], [0], [1], [0, 0, 1, 1], [], []>} : vector<64x64xf32>, vector<64x128xf32>, vector<64x128xf32> -> vector<64x128xf32>
    %c0_16 = arith.constant 0 : index
    %c0_17 = arith.constant 0 : index
    %c0_18 = arith.constant 0 : index
    %17 = vector.load %arg6[%c0_16, %c0_17, %c0_18] : memref<4x64x1xf32, #tpu.memory_space<vmem>>, vector<1x64x1xf32>
    %18 = vector.shape_cast %17 : vector<1x64x1xf32> to vector<64x1xf32>
    %19 = vector.broadcast %18 : vector<64x1xf32> to vector<64x128xf32>
    %20 = arith.addf %16, %19 : vector<64x128xf32>
    %cst_19 = arith.constant 0.00999999977 : f32
    %21 = vector.broadcast %cst_19 : f32 to vector<64x128xf32>
    %22 = arith.mulf %21, %20 : vector<64x128xf32>
    %23 = arith.maximumf %20, %22 : vector<64x128xf32>
    %c0_20 = arith.constant 0 : index
    %c0_21 = arith.constant 0 : index
    %c0_22 = arith.constant 0 : index
    %24 = vector.load %arg7[%c0_20, %c0_21, %c0_22] : memref<4x16x64xf32, #tpu.memory_space<vmem>>, vector<1x16x64xf32>
    %25 = vector.shape_cast %24 : vector<1x16x64xf32> to vector<16x64xf32>
    %cst_23 = arith.constant dense<0.000000e+00> : vector<16x128xf32>
    %26 = tpu.matmul %25, %23, %cst_23 {dimension_numbers = #tpu.dot_dimension_numbers<[1], [0], [0], [1], [0, 0, 1, 1], [], []>} : vector<16x64xf32>, vector<64x128xf32>, vector<16x128xf32> -> vector<16x128xf32>
    %c0_24 = arith.constant 0 : index
    %c0_25 = arith.constant 0 : index
    %c0_26 = arith.constant 0 : index
    %27 = vector.load %arg8[%c0_24, %c0_25, %c0_26] : memref<4x16x1xf32, #tpu.memory_space<vmem>>, vector<1x16x1xf32>
    %28 = vector.shape_cast %27 : vector<1x16x1xf32> to vector<16x1xf32>
    %29 = vector.broadcast %28 : vector<16x1xf32> to vector<16x128xf32>
    %30 = arith.addf %26, %29 : vector<16x128xf32>
    %31 = math.tanh %30 : vector<16x128xf32>
    %32 = vector.extract_strided_slice %31 {offsets = [0, 0], sizes = [8, 128], strides = [1, 1]} : vector<16x128xf32> to vector<8x128xf32>
    %33 = vector.extract_strided_slice %31 {offsets = [8, 0], sizes = [8, 128], strides = [1, 1]} : vector<16x128xf32> to vector<8x128xf32>
    %34 = math.exp %32 : vector<8x128xf32>
    %35 = arith.mulf %2, %34 : vector<8x128xf32>
    %36 = arith.addf %35, %33 : vector<8x128xf32>
    %cst_27 = arith.constant dense<0.000000e+00> : vector<128xf32>
    %37 = vector.multi_reduction <add>, %32, %cst_27 [0] : vector<8x128xf32> to vector<128xf32>
    %38 = vector.shape_cast %37 : vector<128xf32> to vector<1x128xf32>
    %39 = arith.addf %3, %38 : vector<1x128xf32>
    %c1 = arith.constant 1 : index
    %c0_28 = arith.constant 0 : index
    %c0_29 = arith.constant 0 : index
    %40 = vector.load %arg3[%c1, %c0_28, %c0_29] : memref<4x64x8xf32, #tpu.memory_space<vmem>>, vector<1x64x8xf32>
    %41 = vector.shape_cast %40 : vector<1x64x8xf32> to vector<64x8xf32>
    %cst_30 = arith.constant dense<0.000000e+00> : vector<64x128xf32>
    %42 = tpu.matmul %41, %36, %cst_30 {dimension_numbers = #tpu.dot_dimension_numbers<[1], [0], [0], [1], [0, 0, 1, 1], [], []>} : vector<64x8xf32>, vector<8x128xf32>, vector<64x128xf32> -> vector<64x128xf32>
    %c1_31 = arith.constant 1 : index
    %c0_32 = arith.constant 0 : index
    %c0_33 = arith.constant 0 : index
    %43 = vector.load %arg4[%c1_31, %c0_32, %c0_33] : memref<4x64x1xf32, #tpu.memory_space<vmem>>, vector<1x64x1xf32>
    %44 = vector.shape_cast %43 : vector<1x64x1xf32> to vector<64x1xf32>
    %45 = vector.broadcast %44 : vector<64x1xf32> to vector<64x128xf32>
    %46 = arith.addf %42, %45 : vector<64x128xf32>
    %cst_34 = arith.constant 0.00999999977 : f32
    %47 = vector.broadcast %cst_34 : f32 to vector<64x128xf32>
    %48 = arith.mulf %47, %46 : vector<64x128xf32>
    %49 = arith.maximumf %46, %48 : vector<64x128xf32>
    %c1_35 = arith.constant 1 : index
    %c0_36 = arith.constant 0 : index
    %c0_37 = arith.constant 0 : index
    %50 = vector.load %arg5[%c1_35, %c0_36, %c0_37] : memref<4x64x64xf32, #tpu.memory_space<vmem>>, vector<1x64x64xf32>
    %51 = vector.shape_cast %50 : vector<1x64x64xf32> to vector<64x64xf32>
    %cst_38 = arith.constant dense<0.000000e+00> : vector<64x128xf32>
    %52 = tpu.matmul %51, %49, %cst_38 {dimension_numbers = #tpu.dot_dimension_numbers<[1], [0], [0], [1], [0, 0, 1, 1], [], []>} : vector<64x64xf32>, vector<64x128xf32>, vector<64x128xf32> -> vector<64x128xf32>
    %c1_39 = arith.constant 1 : index
    %c0_40 = arith.constant 0 : index
    %c0_41 = arith.constant 0 : index
    %53 = vector.load %arg6[%c1_39, %c0_40, %c0_41] : memref<4x64x1xf32, #tpu.memory_space<vmem>>, vector<1x64x1xf32>
    %54 = vector.shape_cast %53 : vector<1x64x1xf32> to vector<64x1xf32>
    %55 = vector.broadcast %54 : vector<64x1xf32> to vector<64x128xf32>
    %56 = arith.addf %52, %55 : vector<64x128xf32>
    %cst_42 = arith.constant 0.00999999977 : f32
    %57 = vector.broadcast %cst_42 : f32 to vector<64x128xf32>
    %58 = arith.mulf %57, %56 : vector<64x128xf32>
    %59 = arith.maximumf %56, %58 : vector<64x128xf32>
    %c1_43 = arith.constant 1 : index
    %c0_44 = arith.constant 0 : index
    %c0_45 = arith.constant 0 : index
    %60 = vector.load %arg7[%c1_43, %c0_44, %c0_45] : memref<4x16x64xf32, #tpu.memory_space<vmem>>, vector<1x16x64xf32>
    %61 = vector.shape_cast %60 : vector<1x16x64xf32> to vector<16x64xf32>
    %cst_46 = arith.constant dense<0.000000e+00> : vector<16x128xf32>
    %62 = tpu.matmul %61, %59, %cst_46 {dimension_numbers = #tpu.dot_dimension_numbers<[1], [0], [0], [1], [0, 0, 1, 1], [], []>} : vector<16x64xf32>, vector<64x128xf32>, vector<16x128xf32> -> vector<16x128xf32>
    %c1_47 = arith.constant 1 : index
    %c0_48 = arith.constant 0 : index
    %c0_49 = arith.constant 0 : index
    %63 = vector.load %arg8[%c1_47, %c0_48, %c0_49] : memref<4x16x1xf32, #tpu.memory_space<vmem>>, vector<1x16x1xf32>
    %64 = vector.shape_cast %63 : vector<1x16x1xf32> to vector<16x1xf32>
    %65 = vector.broadcast %64 : vector<16x1xf32> to vector<16x128xf32>
    %66 = arith.addf %62, %65 : vector<16x128xf32>
    %67 = math.tanh %66 : vector<16x128xf32>
    %68 = vector.extract_strided_slice %67 {offsets = [0, 0], sizes = [8, 128], strides = [1, 1]} : vector<16x128xf32> to vector<8x128xf32>
    %69 = vector.extract_strided_slice %67 {offsets = [8, 0], sizes = [8, 128], strides = [1, 1]} : vector<16x128xf32> to vector<8x128xf32>
    %70 = math.exp %68 : vector<8x128xf32>
    %71 = arith.mulf %36, %70 : vector<8x128xf32>
    %72 = arith.addf %71, %69 : vector<8x128xf32>
    %cst_50 = arith.constant dense<0.000000e+00> : vector<128xf32>
    %73 = vector.multi_reduction <add>, %68, %cst_50 [0] : vector<8x128xf32> to vector<128xf32>
    %74 = vector.shape_cast %73 : vector<128xf32> to vector<1x128xf32>
    %75 = arith.addf %39, %74 : vector<1x128xf32>
    %c2 = arith.constant 2 : index
    %c0_51 = arith.constant 0 : index
    %c0_52 = arith.constant 0 : index
    %76 = vector.load %arg3[%c2, %c0_51, %c0_52] : memref<4x64x8xf32, #tpu.memory_space<vmem>>, vector<1x64x8xf32>
    %77 = vector.shape_cast %76 : vector<1x64x8xf32> to vector<64x8xf32>
    %cst_53 = arith.constant dense<0.000000e+00> : vector<64x128xf32>
    %78 = tpu.matmul %77, %72, %cst_53 {dimension_numbers = #tpu.dot_dimension_numbers<[1], [0], [0], [1], [0, 0, 1, 1], [], []>} : vector<64x8xf32>, vector<8x128xf32>, vector<64x128xf32> -> vector<64x128xf32>
    %c2_54 = arith.constant 2 : index
    %c0_55 = arith.constant 0 : index
    %c0_56 = arith.constant 0 : index
    %79 = vector.load %arg4[%c2_54, %c0_55, %c0_56] : memref<4x64x1xf32, #tpu.memory_space<vmem>>, vector<1x64x1xf32>
    %80 = vector.shape_cast %79 : vector<1x64x1xf32> to vector<64x1xf32>
    %81 = vector.broadcast %80 : vector<64x1xf32> to vector<64x128xf32>
    %82 = arith.addf %78, %81 : vector<64x128xf32>
    %cst_57 = arith.constant 0.00999999977 : f32
    %83 = vector.broadcast %cst_57 : f32 to vector<64x128xf32>
    %84 = arith.mulf %83, %82 : vector<64x128xf32>
    %85 = arith.maximumf %82, %84 : vector<64x128xf32>
    %c2_58 = arith.constant 2 : index
    %c0_59 = arith.constant 0 : index
    %c0_60 = arith.constant 0 : index
    %86 = vector.load %arg5[%c2_58, %c0_59, %c0_60] : memref<4x64x64xf32, #tpu.memory_space<vmem>>, vector<1x64x64xf32>
    %87 = vector.shape_cast %86 : vector<1x64x64xf32> to vector<64x64xf32>
    %cst_61 = arith.constant dense<0.000000e+00> : vector<64x128xf32>
    %88 = tpu.matmul %87, %85, %cst_61 {dimension_numbers = #tpu.dot_dimension_numbers<[1], [0], [0], [1], [0, 0, 1, 1], [], []>} : vector<64x64xf32>, vector<64x128xf32>, vector<64x128xf32> -> vector<64x128xf32>
    %c2_62 = arith.constant 2 : index
    %c0_63 = arith.constant 0 : index
    %c0_64 = arith.constant 0 : index
    %89 = vector.load %arg6[%c2_62, %c0_63, %c0_64] : memref<4x64x1xf32, #tpu.memory_space<vmem>>, vector<1x64x1xf32>
    %90 = vector.shape_cast %89 : vector<1x64x1xf32> to vector<64x1xf32>
    %91 = vector.broadcast %90 : vector<64x1xf32> to vector<64x128xf32>
    %92 = arith.addf %88, %91 : vector<64x128xf32>
    %cst_65 = arith.constant 0.00999999977 : f32
    %93 = vector.broadcast %cst_65 : f32 to vector<64x128xf32>
    %94 = arith.mulf %93, %92 : vector<64x128xf32>
    %95 = arith.maximumf %92, %94 : vector<64x128xf32>
    %c2_66 = arith.constant 2 : index
    %c0_67 = arith.constant 0 : index
    %c0_68 = arith.constant 0 : index
    %96 = vector.load %arg7[%c2_66, %c0_67, %c0_68] : memref<4x16x64xf32, #tpu.memory_space<vmem>>, vector<1x16x64xf32>
    %97 = vector.shape_cast %96 : vector<1x16x64xf32> to vector<16x64xf32>
    %cst_69 = arith.constant dense<0.000000e+00> : vector<16x128xf32>
    %98 = tpu.matmul %97, %95, %cst_69 {dimension_numbers = #tpu.dot_dimension_numbers<[1], [0], [0], [1], [0, 0, 1, 1], [], []>} : vector<16x64xf32>, vector<64x128xf32>, vector<16x128xf32> -> vector<16x128xf32>
    %c2_70 = arith.constant 2 : index
    %c0_71 = arith.constant 0 : index
    %c0_72 = arith.constant 0 : index
    %99 = vector.load %arg8[%c2_70, %c0_71, %c0_72] : memref<4x16x1xf32, #tpu.memory_space<vmem>>, vector<1x16x1xf32>
    %100 = vector.shape_cast %99 : vector<1x16x1xf32> to vector<16x1xf32>
    %101 = vector.broadcast %100 : vector<16x1xf32> to vector<16x128xf32>
    %102 = arith.addf %98, %101 : vector<16x128xf32>
    %103 = math.tanh %102 : vector<16x128xf32>
    %104 = vector.extract_strided_slice %103 {offsets = [0, 0], sizes = [8, 128], strides = [1, 1]} : vector<16x128xf32> to vector<8x128xf32>
    %105 = vector.extract_strided_slice %103 {offsets = [8, 0], sizes = [8, 128], strides = [1, 1]} : vector<16x128xf32> to vector<8x128xf32>
    %106 = math.exp %104 : vector<8x128xf32>
    %107 = arith.mulf %72, %106 : vector<8x128xf32>
    %108 = arith.addf %107, %105 : vector<8x128xf32>
    %cst_73 = arith.constant dense<0.000000e+00> : vector<128xf32>
    %109 = vector.multi_reduction <add>, %104, %cst_73 [0] : vector<8x128xf32> to vector<128xf32>
    %110 = vector.shape_cast %109 : vector<128xf32> to vector<1x128xf32>
    %111 = arith.addf %75, %110 : vector<1x128xf32>
    %c3 = arith.constant 3 : index
    %c0_74 = arith.constant 0 : index
    %c0_75 = arith.constant 0 : index
    %112 = vector.load %arg3[%c3, %c0_74, %c0_75] : memref<4x64x8xf32, #tpu.memory_space<vmem>>, vector<1x64x8xf32>
    %113 = vector.shape_cast %112 : vector<1x64x8xf32> to vector<64x8xf32>
    %cst_76 = arith.constant dense<0.000000e+00> : vector<64x128xf32>
    %114 = tpu.matmul %113, %108, %cst_76 {dimension_numbers = #tpu.dot_dimension_numbers<[1], [0], [0], [1], [0, 0, 1, 1], [], []>} : vector<64x8xf32>, vector<8x128xf32>, vector<64x128xf32> -> vector<64x128xf32>
    %c3_77 = arith.constant 3 : index
    %c0_78 = arith.constant 0 : index
    %c0_79 = arith.constant 0 : index
    %115 = vector.load %arg4[%c3_77, %c0_78, %c0_79] : memref<4x64x1xf32, #tpu.memory_space<vmem>>, vector<1x64x1xf32>
    %116 = vector.shape_cast %115 : vector<1x64x1xf32> to vector<64x1xf32>
    %117 = vector.broadcast %116 : vector<64x1xf32> to vector<64x128xf32>
    %118 = arith.addf %114, %117 : vector<64x128xf32>
    %cst_80 = arith.constant 0.00999999977 : f32
    %119 = vector.broadcast %cst_80 : f32 to vector<64x128xf32>
    %120 = arith.mulf %119, %118 : vector<64x128xf32>
    %121 = arith.maximumf %118, %120 : vector<64x128xf32>
    %c3_81 = arith.constant 3 : index
    %c0_82 = arith.constant 0 : index
    %c0_83 = arith.constant 0 : index
    %122 = vector.load %arg5[%c3_81, %c0_82, %c0_83] : memref<4x64x64xf32, #tpu.memory_space<vmem>>, vector<1x64x64xf32>
    %123 = vector.shape_cast %122 : vector<1x64x64xf32> to vector<64x64xf32>
    %cst_84 = arith.constant dense<0.000000e+00> : vector<64x128xf32>
    %124 = tpu.matmul %123, %121, %cst_84 {dimension_numbers = #tpu.dot_dimension_numbers<[1], [0], [0], [1], [0, 0, 1, 1], [], []>} : vector<64x64xf32>, vector<64x128xf32>, vector<64x128xf32> -> vector<64x128xf32>
    %c3_85 = arith.constant 3 : index
    %c0_86 = arith.constant 0 : index
    %c0_87 = arith.constant 0 : index
    %125 = vector.load %arg6[%c3_85, %c0_86, %c0_87] : memref<4x64x1xf32, #tpu.memory_space<vmem>>, vector<1x64x1xf32>
    %126 = vector.shape_cast %125 : vector<1x64x1xf32> to vector<64x1xf32>
    %127 = vector.broadcast %126 : vector<64x1xf32> to vector<64x128xf32>
    %128 = arith.addf %124, %127 : vector<64x128xf32>
    %cst_88 = arith.constant 0.00999999977 : f32
    %129 = vector.broadcast %cst_88 : f32 to vector<64x128xf32>
    %130 = arith.mulf %129, %128 : vector<64x128xf32>
    %131 = arith.maximumf %128, %130 : vector<64x128xf32>
    %c3_89 = arith.constant 3 : index
    %c0_90 = arith.constant 0 : index
    %c0_91 = arith.constant 0 : index
    %132 = vector.load %arg7[%c3_89, %c0_90, %c0_91] : memref<4x16x64xf32, #tpu.memory_space<vmem>>, vector<1x16x64xf32>
    %133 = vector.shape_cast %132 : vector<1x16x64xf32> to vector<16x64xf32>
    %cst_92 = arith.constant dense<0.000000e+00> : vector<16x128xf32>
    %134 = tpu.matmul %133, %131, %cst_92 {dimension_numbers = #tpu.dot_dimension_numbers<[1], [0], [0], [1], [0, 0, 1, 1], [], []>} : vector<16x64xf32>, vector<64x128xf32>, vector<16x128xf32> -> vector<16x128xf32>
    %c3_93 = arith.constant 3 : index
    %c0_94 = arith.constant 0 : index
    %c0_95 = arith.constant 0 : index
    %135 = vector.load %arg8[%c3_93, %c0_94, %c0_95] : memref<4x16x1xf32, #tpu.memory_space<vmem>>, vector<1x16x1xf32>
    %136 = vector.shape_cast %135 : vector<1x16x1xf32> to vector<16x1xf32>
    %137 = vector.broadcast %136 : vector<16x1xf32> to vector<16x128xf32>
    %138 = arith.addf %134, %137 : vector<16x128xf32>
    %139 = math.tanh %138 : vector<16x128xf32>
    %140 = vector.extract_strided_slice %139 {offsets = [0, 0], sizes = [8, 128], strides = [1, 1]} : vector<16x128xf32> to vector<8x128xf32>
    %141 = vector.extract_strided_slice %139 {offsets = [8, 0], sizes = [8, 128], strides = [1, 1]} : vector<16x128xf32> to vector<8x128xf32>
    %142 = math.exp %140 : vector<8x128xf32>
    %143 = arith.mulf %108, %142 : vector<8x128xf32>
    %144 = arith.addf %143, %141 : vector<8x128xf32>
    %cst_96 = arith.constant dense<0.000000e+00> : vector<128xf32>
    %145 = vector.multi_reduction <add>, %140, %cst_96 [0] : vector<8x128xf32> to vector<128xf32>
    %146 = vector.shape_cast %145 : vector<128xf32> to vector<1x128xf32>
    %147 = arith.addf %111, %146 : vector<1x128xf32>
    %cst_97 = arith.constant 1.000000e+00 : f32
    %148 = vector.broadcast %cst_97 : f32 to vector<8x128xf32>
    %149 = arith.addf %144, %148 : vector<8x128xf32>
    %c0_98 = arith.constant 0 : index
    %c0_99 = arith.constant 0 : index
    %150 = vector.load %arg9[%c0_98, %c0_99] : memref<8x1xf32, #tpu.memory_space<vmem>>, vector<8x1xf32>
    %151 = vector.broadcast %150 : vector<8x1xf32> to vector<8x128xf32>
    %152 = arith.mulf %149, %151 : vector<8x128xf32>
    %c0_100 = arith.constant 0 : index
    %c0_101 = arith.constant 0 : index
    %153 = vector.load %arg10[%c0_100, %c0_101] : memref<8x1xf32, #tpu.memory_space<vmem>>, vector<8x1xf32>
    %154 = vector.broadcast %153 : vector<8x1xf32> to vector<8x128xf32>
    %155 = arith.addf %152, %154 : vector<8x128xf32>
    %c0_102 = arith.constant 0 : index
    %c0_103 = arith.constant 0 : index
    %156 = vector.load %arg11[%c0_102, %c0_103] : memref<8x128xf32, #tpu.memory_space<vmem>>, vector<8x128xf32>
    tpu.vector_store %arg11[%c0_102, %c0_103], %155 {strides = array<i32>} : memref<8x128xf32, #tpu.memory_space<vmem>>, vector<8x128xf32>,
    %c0_104 = arith.constant 0 : index
    %c0_105 = arith.constant 0 : index
    %157 = vector.load %arg12[%c0_104, %c0_105] : memref<1x128xf32, #tpu.memory_space<vmem>>, vector<1x128xf32>
    tpu.vector_store %arg12[%c0_104, %c0_105], %147 {strides = array<i32>} : memref<1x128xf32, #tpu.memory_space<vmem>>, vector<1x128xf32>,
    return
  }
  func.func @transform_0(%arg0: i32) -> (i32, i32) {
    %c0_i32 = arith.constant 0 : i32
    %c0_i32_0 = arith.constant 0 : i32
    return %arg0, %c0_i32 : i32, i32
  }
  func.func @transform_1(%arg0: i32) -> (i32, i32) {
    %c0_i32 = arith.constant 0 : i32
    %c0_i32_0 = arith.constant 0 : i32
    %c0_i32_1 = arith.constant 0 : i32
    return %c0_i32, %c0_i32_0 : i32, i32
  }
  func.func @transform_2(%arg0: i32) -> (i32, i32, i32) {
    %c0_i32 = arith.constant 0 : i32
    %c0_i32_0 = arith.constant 0 : i32
    %c0_i32_1 = arith.constant 0 : i32
    %c0_i32_2 = arith.constant 0 : i32
    return %c0_i32, %c0_i32_0, %c0_i32_1 : i32, i32, i32
  }
  func.func @transform_3(%arg0: i32) -> (i32, i32, i32) {
    %c0_i32 = arith.constant 0 : i32
    %c0_i32_0 = arith.constant 0 : i32
    %c0_i32_1 = arith.constant 0 : i32
    %c0_i32_2 = arith.constant 0 : i32
    return %c0_i32, %c0_i32_0, %c0_i32_1 : i32, i32, i32
  }
  func.func @transform_4(%arg0: i32) -> (i32, i32, i32) {
    %c0_i32 = arith.constant 0 : i32
    %c0_i32_0 = arith.constant 0 : i32
    %c0_i32_1 = arith.constant 0 : i32
    %c0_i32_2 = arith.constant 0 : i32
    return %c0_i32, %c0_i32_0, %c0_i32_1 : i32, i32, i32
  }
  func.func @transform_5(%arg0: i32) -> (i32, i32, i32) {
    %c0_i32 = arith.constant 0 : i32
    %c0_i32_0 = arith.constant 0 : i32
    %c0_i32_1 = arith.constant 0 : i32
    %c0_i32_2 = arith.constant 0 : i32
    return %c0_i32, %c0_i32_0, %c0_i32_1 : i32, i32, i32
  }
  func.func @transform_6(%arg0: i32) -> (i32, i32, i32) {
    %c0_i32 = arith.constant 0 : i32
    %c0_i32_0 = arith.constant 0 : i32
    %c0_i32_1 = arith.constant 0 : i32
    %c0_i32_2 = arith.constant 0 : i32
    return %c0_i32, %c0_i32_0, %c0_i32_1 : i32, i32, i32
  }
  func.func @transform_7(%arg0: i32) -> (i32, i32, i32) {
    %c0_i32 = arith.constant 0 : i32
    %c0_i32_0 = arith.constant 0 : i32
    %c0_i32_1 = arith.constant 0 : i32
    %c0_i32_2 = arith.constant 0 : i32
    return %c0_i32, %c0_i32_0, %c0_i32_1 : i32, i32, i32
  }
  func.func @transform_8(%arg0: i32) -> (i32, i32) {
    %c0_i32 = arith.constant 0 : i32
    %c0_i32_0 = arith.constant 0 : i32
    %c0_i32_1 = arith.constant 0 : i32
    return %c0_i32, %c0_i32_0 : i32, i32
  }
  func.func @transform_9(%arg0: i32) -> (i32, i32) {
    %c0_i32 = arith.constant 0 : i32
    %c0_i32_0 = arith.constant 0 : i32
    %c0_i32_1 = arith.constant 0 : i32
    return %c0_i32, %c0_i32_0 : i32, i32
  }
  func.func @transform_10(%arg0: i32) -> (i32, i32) {
    %c0_i32 = arith.constant 0 : i32
    %c0_i32_0 = arith.constant 0 : i32
    return %c0_i32, %arg0 : i32, i32
  }
  func.func @transform_11(%arg0: i32) -> (i32, i32) {
    %c0_i32 = arith.constant 0 : i32
    %c0_i32_0 = arith.constant 0 : i32
    return %c0_i32, %arg0 : i32, i32
  }
}

</mosaic_0001>

<bundles_post_ra>
// kernel: tpu_custom_call.1
= control target key start
LH: loop header
LB: loop body
LE: loop exit
PB: predicated region body
PF: predicated region fallthrough
CT: control target
= control target key end

     0   :  { %17 = vsyncpa [#allocation3], 0  ;;  %vm56_vm0 = vcmask 64512   ;;  %s3023_s0 = inlined_call_operand.vmem [shape: f32[128,8], index: 0, kind: input, shape index: {}]   ;;  %s3024_s1 = inlined_call_operand.vmem [shape: f32[8,8], index: 1, kind: input, shape index: {}]   ;;  %s3025_s2 = inlined_call_operand.vmem [shape: f32[4,64,8], index: 2, kind: input, shape index: {}]   ;;  %s3026_s3 = inlined_call_operand.vmem [shape: f32[4,64,1], index: 3, kind: input, shape index: {}]   ;;  %s3027_s4 = inlined_call_operand.vmem [shape: f32[4,64,64], index: 4, kind: input, shape index: {}]   ;;  %s3028_s5 = inlined_call_operand.vmem [shape: f32[4,64,1], index: 5, kind: input, shape index: {}]   ;;  %s3029_s6 = inlined_call_operand.vmem [shape: f32[4,16,64], index: 6, kind: input, shape index: {}]   ;;  %s3030_s7 = inlined_call_operand.vmem [shape: f32[4,16,1], index: 7, kind: input, shape index: {}]   ;;  %s3031_s8 = inlined_call_operand.vmem [shape: f32[8,1], index: 8, kind: input, shape index: {}]   ;;  %s3032_s9 = inlined_call_operand.vmem [shape: f32[8,1], index: 9, kind: input, shape index: {}]   ;;  %s3033_s10 = inlined_call_operand.hbm [shape: f32[8,128], index: 10, kind: output, shape index: {0}]   ;;  %s3034_s11 = inlined_call_operand.hbm [shape: f32[1,128], index: 11, kind: output, shape index: {1}]  }
   0x1   :  { %v55_v0 = vld [vmem:[%s3023_s0 + $0x78] sm:$0xff]  ;;  %v54_v1 = vld [vmem:[%s3023_s0 + $0x70] sm:$0xff]  ;;  %v53_v2 = vld [vmem:[%s3023_s0 + $0x68] sm:$0xff] }
   0x2   :  { %v106_v3 = vsel %vm56_vm0, %v55_v0, 0  ;;  %v103_v4 = vsel %vm56_vm0, %v54_v1, 0  ;;  %v100_v5 = vsel %vm56_vm0, %v53_v2, 0  ;;  %v52_v6 = vld [vmem:[%s3023_s0 + $0x60] sm:$0xff]  ;;  %v51_v7 = vld [vmem:[%s3023_s0 + $0x58] sm:$0xff]  ;;  %v50_v17 = vld [vmem:[%s3023_s0 + $0x50] sm:$0xff] }
   0x3   :  { %v2189_v8 = vand.u32 4294901760, %v106_v3  ;;  %v2191_v9 = vand.u32 4294901760, %v103_v4  ;;  %v2193_v10 = vand.u32 4294901760, %v100_v5  ;;  %v97_v11 = vsel %vm56_vm0, %v52_v6, 0 }
   0x4   :  { %v2196_v12 = vand.u32 4294901760, %v97_v11  ;;  %v94_v16 = vsel %vm56_vm0, %v51_v7, 0 }
   0x5   :  { %109 = vmatpush.xpose.msra.mxu0 %v2189_v8  ;;  %v2200_v13 = vsub.f32 %v106_v3, %v2189_v8  ;;  %v2203_v14 = vsub.f32 %v103_v4, %v2191_v9  ;;  %v2206_v15 = vsub.f32 %v100_v5, %v2193_v10  ;;  %305 = vmatpush.xpose.msra.mxu3 %v2189_v8 }
   0x6   :  { %18 = vsyncpa [#allocation5], 0  ;;  %v2216_v20 = vand.u32 4294901760, %v94_v16  ;;  %v91_v21 = vsel %vm56_vm0, %v50_v17, 0  ;;  %v2228_v25 = vsub.f32 %v97_v11, %v2196_v12  ;;  %v49_v26 = vld [vmem:[%s3023_s0 + $0x48] sm:$0xff]  ;;  %v48_v34 = vld [vmem:[%s3023_s0 + $0x40] sm:$0xff] }
   0x7   :  { %v151_v18 = vand.u32 4294901760, %v2200_v13  ;;  %v157_v19 = vand.u32 4294901760, %v2203_v14  ;;  %252 = vmatpush.xpose.msra.mxu2 %v2200_v13  ;;  %v163_v24 = vand.u32 4294901760, %v2206_v15  ;;  %v2235_v28 = vand.u32 4294901760, %v91_v21  ;;  %v47_v41 = vld [vmem:[%s3023_s0 + $0x38] sm:$0xff]  ;;  %v46_v48 = vld [vmem:[%s3023_s0 + $0x30] sm:$0xff] }
   0x8   :  { %v88_v29 = vsel %vm56_vm0, %v49_v26, 0  ;;  %v169_v32 = vand.u32 4294901760, %v2228_v25  ;;  %v2244_v33 = vsub.f32 %v94_v16, %v2216_v20  ;;  %v85_v40 = vsel %vm56_vm0, %v48_v34, 0  ;;  %v45_v54 = vld [vmem:[%s3023_s0 + $0x28] sm:$0xff]  ;;  %v44_v62 = vld [vmem:[%s3023_s0 + $0x20] sm:$0xff]  ;;  %v43_v5 = vld [vmem:[%s3023_s0 + $0x18] sm:$0xff] }
   0x9   :  { %111 = vmatpush.xpose.msra.mxu0 %v2191_v9  ;;  %v152_v22 = vsub.f32 %v2200_v13, %v151_v18  ;;  %v158_v23 = vsub.f32 %v2203_v14, %v157_v19  ;;  %307 = vmatpush.xpose.msra.mxu3 %v2191_v9  ;;  %v164_v31 = vsub.f32 %v2206_v15, %v163_v24  ;;  %v2251_v35 = vand.u32 4294901760, %v88_v29  ;;  %v41_v34 = vld [vmem:[%s3023_s0 + $0x8] sm:$0xff]  ;;  %v39_v13 = vld [vmem:[%s3024_s1] sm:$0xff]  ;;  %s1823_s24 = sshll.u32 %s3034_s11, 4  ;;  %s1824_s24 = int_to_ptr.hbm [resolvable:$true] %s1823_s24 }
   0xa   :  { %v170_v37 = vsub.f32 %v2228_v25, %v169_v32  ;;  %v175_v38 = vand.u32 4294901760, %v2244_v33  ;;  %v2259_v39 = vsub.f32 %v91_v21, %v2235_v28  ;;  %v2275_v46 = vand.u32 4294901760, %v85_v40 }
   0xb   :  { %v153_v27 = vand.u32 4294901760, %v152_v22  ;;  %255 = vmatpush.xpose.msra.mxu2 %v2203_v14  ;;  %v159_v30 = vand.u32 4294901760, %v158_v23  ;;  %v165_v36 = vand.u32 4294901760, %v164_v31  ;;  %v2268_v42 = vsub.f32 %v88_v29, %v2251_v35  ;;  %v42_v22 = vld [vmem:[%s3023_s0 + $0x10] sm:$0xff] }
   0xc   :  { %v171_v43 = vand.u32 4294901760, %v170_v37  ;;  %v176_v44 = vsub.f32 %v2244_v33, %v175_v38  ;;  %v181_v45 = vand.u32 4294901760, %v2259_v39  ;;  %v82_v47 = vsel %vm56_vm0, %v47_v41, 0 }
   0xd   :  { %154 = vmatpush.xpose.msra.mxu1 %v153_v27  ;;  %113 = vmatpush.xpose.msra.mxu0 %v2193_v10  ;;  %v187_v49 = vand.u32 4294901760, %v2268_v42  ;;  %v2288_v52 = vand.u32 4294901760, %v82_v47  ;;  %v2291_v53 = vsub.f32 %v85_v40, %v2275_v46  ;;  %v79_v55 = vsel %vm56_vm0, %v46_v48, 0 }
   0xe   :  { %309 = vmatpush.xpose.msra.mxu3 %v2193_v10  ;;  %v177_v50 = vand.u32 4294901760, %v176_v44  ;;  %v182_v51 = vsub.f32 %v2259_v39, %v181_v45  ;;  %v76_v57 = vsel %vm56_vm0, %v45_v54, 0  ;;  %v2305_v60 = vand.u32 4294901760, %v79_v55 }
   0xf   :  { %258 = vmatpush.xpose.msra.mxu2 %v2206_v15  ;;  %v188_v56 = vsub.f32 %v2268_v42, %v187_v49  ;;  %v193_v59 = vand.u32 4294901760, %v2291_v53  ;;  %v2308_v61 = vsub.f32 %v82_v47, %v2288_v52  ;;  %v2315_v0 = vand.u32 4294901760, %v76_v57  ;;  %v40_v47 = vld [vmem:[%s3023_s0] sm:$0xff] }
  0x10   :  { %v183_v58 = vand.u32 4294901760, %v182_v51  ;;  %v2323_v3 = vsub.f32 %v79_v55, %v2305_v60  ;;  %v73_v4 = vsel %vm56_vm0, %v44_v62, 0  ;;  %v70_v21 = vsel %vm56_vm0, %v43_v5, 0 }
  0x11   :  { %160 = vmatpush.xpose.msra.mxu1 %v159_v30  ;;  %115 = vmatpush.xpose.msra.mxu0 %v2196_v12  ;;  %v189_v63 = vand.u32 4294901760, %v188_v56  ;;  %v194_v1 = vsub.f32 %v2291_v53, %v193_v59  ;;  %v199_v2 = vand.u32 4294901760, %v2308_v61  ;;  %v2331_v6 = vand.u32 4294901760, %v73_v4 }
  0x12   :  { %311 = vmatpush.xpose.msra.mxu3 %v2196_v12  ;;  %v205_v16 = vand.u32 4294901760, %v2323_v3  ;;  %v2339_v17 = vsub.f32 %v76_v57, %v2315_v0  ;;  %v2355_v30 = vand.u32 4294901760, %v70_v21  ;;  %v67_v31 = vsel %vm56_vm0, %v42_v22, 0 }
  0x13   :  { %261 = vmatpush.xpose.msra.mxu2 %v2228_v25  ;;  %v195_v7 = vand.u32 4294901760, %v194_v1  ;;  %v200_v11 = vsub.f32 %v2308_v61, %v199_v2  ;;  %v2348_v23 = vsub.f32 %v73_v4, %v2331_v6  ;;  %v2368_v41 = vand.u32 4294901760, %v67_v31  ;;  %v463_v25 = vld [vmem:[%s3026_s3 + $0x30] sm:$0xff] }
  0x14   :  { %v206_v27 = vsub.f32 %v2323_v3, %v205_v16  ;;  %v211_v29 = vand.u32 4294901760, %v2339_v17  ;;  %v64_v44 = vsel %vm56_vm0, %v41_v34, 0  ;;  %v61_v56 = vsel %vm56_vm0, %v40_v47, 0  ;;  %v1924_v47 = vld [vmem:[%s3026_s3 + $0xb8] sm:$0xff] }
  0x15   :  { %166 = vmatpush.xpose.msra.mxu1 %v165_v36  ;;  %117 = vmatpush.xpose.msra.mxu0 %v2216_v20  ;;  %v201_v26 = vand.u32 4294901760, %v200_v11  ;;  %v217_v36 = vand.u32 4294901760, %v2348_v23  ;;  %v2384_v54 = vand.u32 4294901760, %v64_v44  ;;  %v2387_v55 = vsub.f32 %v67_v31, %v2368_v41 }
  0x16   :  { %313 = vmatpush.xpose.msra.mxu3 %v2216_v20  ;;  %v207_v37 = vand.u32 4294901760, %v206_v27  ;;  %v212_v40 = vsub.f32 %v2339_v17, %v211_v29  ;;  %v58_v14 = vsel %vm56_vm0, %v39_v13, 0  ;;  %v1977_v13 = vld [vmem:[%s3026_s3 + $0xf0] sm:$0xff]  ;;  %vm642_vm1 = vcmask 523264  }
  0x17   :  { %264 = vmatpush.xpose.msra.mxu2 %v2244_v33  ;;  %v218_v48 = vsub.f32 %v2348_v23, %v217_v36  ;;  %v229_v62 = vand.u32 4294901760, %v2387_v55  ;;  %v2400_v1 = vsub.f32 %v64_v44, %v2384_v54  ;;  %v458_v33 = vld [vmem:[%s3026_s3 + $0x8] sm:$0xff]  ;;  %v1905_v44 = vld [vmem:[%s3030_s7 + $0x10] sm:$0xff] }
  0x19   :  { %172 = vmatpush.xpose.msra.mxu1 %v171_v43  ;;  %119 = vmatpush.xpose.msra.mxu0 %v2235_v28  ;;  %v2371_v43 = vsub.f32 %v70_v21, %v2355_v30  ;;  %v219_v57 = vand.u32 4294901760, %v218_v48  ;;  %v230_v5 = vsub.f32 %v2387_v55, %v229_v62  ;;  %v1923_v48 = vld [vmem:[%s3026_s3 + $0xb0] sm:$0xff] }
  0x1a   :  { %315 = vmatpush.xpose.msra.mxu3 %v2235_v28 }
  0x1b   :  { %267 = vmatpush.xpose.msra.mxu2 %v2259_v39  ;;  %v223_v51 = vand.u32 4294901760, %v2371_v43  ;;  %v231_v21 = vand.u32 4294901760, %v230_v5  ;;  %v600_v39 = vld [vmem:[%s3028_s5 + $0x30] sm:$0xff]  ;;  %v1941_v5 = vld [vmem:[%s3028_s5 + $0x80] sm:$0xff] }
  0x1d   :  { %178 = vmatpush.xpose.msra.mxu1 %v177_v50  ;;  %121 = vmatpush.xpose.msra.mxu0 %v2251_v35  ;;  %v213_v50 = vand.u32 4294901760, %v212_v40  ;;  %v1889_v40 = vld [vmem:[%s3028_s5 + $0x50] sm:$0xff] }
  0x1e   :  { %317 = vmatpush.xpose.msra.mxu3 %v2251_v35 }
  0x1f   :  { %270 = vmatpush.xpose.msra.mxu2 %v2268_v42  ;;  %v599_v42 = vld [vmem:[%s3028_s5 + $0x28] sm:$0xff] }
  0x21   :  { %184 = vmatpush.xpose.msra.mxu1 %v183_v58  ;;  %123 = vmatpush.xpose.msra.mxu0 %v2275_v46  ;;  %v224_v58 = vsub.f32 %v2371_v43, %v223_v51 }
  0x22   :  { %319 = vmatpush.xpose.msra.mxu3 %v2275_v46 }
  0x23   :  { %273 = vmatpush.xpose.msra.mxu2 %v2291_v53  ;;  %v225_v4 = vand.u32 4294901760, %v224_v58  ;;  %v594_v53 = vld [vmem:[%s3028_s5] sm:$0xff]  ;;  %v1946_v58 = vld [vmem:[%s3028_s5 + $0xa8] sm:$0xff] }
  0x25   :  { %190 = vmatpush.xpose.msra.mxu1 %v189_v63  ;;  %125 = vmatpush.xpose.msra.mxu0 %v2288_v52  ;;  %v2397_v63 = vand.u32 4294901760, %v61_v56 }
  0x26   :  { %321 = vmatpush.xpose.msra.mxu3 %v2288_v52 }
  0x27   :  { %276 = vmatpush.xpose.msra.mxu2 %v2308_v61  ;;  %v2410_v11 = vsub.f32 %v61_v56, %v2397_v63  ;;  %v1870_v61 = vld [vmem:[%s3026_s3 + $0x78] sm:$0xff]  ;;  %v1888_v56 = vld [vmem:[%s3028_s5 + $0x48] sm:$0xff] }
  0x29   :  { %196 = vmatpush.xpose.msra.mxu1 %v195_v7  ;;  %127 = vmatpush.xpose.msra.mxu0 %v2305_v60  ;;  %v235_v7 = vand.u32 4294901760, %v2400_v1 }
  0x2a   :  { %323 = vmatpush.xpose.msra.mxu3 %v2305_v60 }
  0x2b   :  { %279 = vmatpush.xpose.msra.mxu2 %v2323_v3  ;;  %v236_v22 = vsub.f32 %v2400_v1, %v235_v7  ;;  %v1867_v3 = vld [vmem:[%s3026_s3 + $0x60] sm:$0xff] }
  0x2d   :  { %202 = vmatpush.xpose.msra.mxu1 %v201_v26  ;;  %129 = vmatpush.xpose.msra.mxu0 %v2315_v0  ;;  %v241_v26 = vand.u32 4294901760, %v2410_v11  ;;  %v237_v27 = vand.u32 4294901760, %v236_v22 }
  0x2e   :  { %325 = vmatpush.xpose.msra.mxu3 %v2315_v0 }
  0x2f   :  { %282 = vmatpush.xpose.msra.mxu2 %v2339_v17  ;;  %v242_v31 = vsub.f32 %v2410_v11, %v241_v26  ;;  %v1864_v17 = vld [vmem:[%s3026_s3 + $0x48] sm:$0xff] }
  0x31   :  { %208 = vmatpush.xpose.msra.mxu1 %v207_v37  ;;  %131 = vmatpush.xpose.msra.mxu0 %v2331_v6  ;;  %v243_v34 = vand.u32 4294901760, %v242_v31  ;;  %v1890_v37 = vld [vmem:[%s3028_s5 + $0x58] sm:$0xff] }
  0x32   :  { %327 = vmatpush.xpose.msra.mxu3 %v2331_v6  ;;  %v1978_v31 = vld [vmem:[%s3026_s3 + $0xf8] sm:$0xff] }
  0x33   :  { %285 = vmatpush.xpose.msra.mxu2 %v2348_v23  ;;  %v1863_v23 = vld [vmem:[%s3026_s3 + $0x40] sm:$0xff] }
  0x35   :  { %214 = vmatpush.xpose.msra.mxu1 %v213_v50  ;;  %133 = vmatpush.xpose.msra.mxu0 %v2355_v30  ;;  %v1921_v50 = vld [vmem:[%s3026_s3 + $0xa0] sm:$0xff] }
  0x36   :  { %329 = vmatpush.xpose.msra.mxu3 %v2355_v30 }
  0x37   :  { %288 = vmatpush.xpose.msra.mxu2 %v2371_v43  ;;  %v1887_v43 = vld [vmem:[%s3028_s5 + $0x40] sm:$0xff] }
  0x39   :  { %220 = vmatpush.xpose.msra.mxu1 %v219_v57  ;;  %135 = vmatpush.xpose.msra.mxu0 %v2368_v41  ;;  %v1947_v57 = vld [vmem:[%s3028_s5 + $0xb0] sm:$0xff] }
  0x3a   :  { %331 = vmatpush.xpose.msra.mxu3 %v2368_v41 }
  0x3b   :  { %291 = vmatpush.xpose.msra.mxu2 %v2387_v55  ;;  %v1917_v55 = vld [vmem:[%s3026_s3 + $0x80] sm:$0xff] }
  0x3d   :  { %226 = vmatpush.xpose.msra.mxu1 %v225_v4  ;;  %137 = vmatpush.xpose.msra.mxu0 %v2384_v54  ;;  %v1922_v4 = vld [vmem:[%s3026_s3 + $0xa8] sm:$0xff] }
  0x3e   :  { %333 = vmatpush.xpose.msra.mxu3 %v2384_v54 }
  0x3f   :  { %294 = vmatpush.xpose.msra.mxu2 %v2400_v1  ;;  %v1943_v1 = vld [vmem:[%s3028_s5 + $0x90] sm:$0xff] }
  0x41   :  { %232 = vmatpush.xpose.msra.mxu1 %v231_v21  ;;  %139 = vmatpush.xpose.msra.mxu0 %v2397_v63 }
  0x42   :  { %335 = vmatpush.xpose.msra.mxu3 %v2397_v63 }
  0x43   :  { %297 = vmatpush.xpose.msra.mxu2 %v2410_v11 }
  0x45   :  { %346 = vmatpush.xpose.msrb.mxu0 %v151_v18  ;;  %238 = vmatpush.xpose.msra.mxu1 %v237_v27  ;;  %v1919_v27 = vld [vmem:[%s3026_s3 + $0x90] sm:$0xff] }
  0x49   :  { %350 = vmatpush.xpose.msrb.mxu0 %v157_v19  ;;  %244 = vmatpush.xpose.msra.mxu1 %v243_v34  ;;  %v462_v19 = vld [vmem:[%s3026_s3 + $0x28] sm:$0xff] }
  0x4d   :  { %413 = vmatpush.xpose.msrb.mxu1 %v2189_v8  ;;  %354 = vmatpush.xpose.msrb.mxu0 %v163_v24  ;;  %v140_v8 = vand.u32 4294901760, %v58_v14  ;;  %v460_v24 = vld [vmem:[%s3026_s3 + $0x18] sm:$0xff] }
  0x4f   :  { %v141_v18 = vsub.f32 %v58_v14, %v140_v8  ;;  %246 = vmatmul.f32.vlgmr.msra.gmra.mxu1 %v140_v8 }
  0x51   :  { %415 = vmatpush.xpose.msrb.mxu1 %v2191_v9  ;;  %358 = vmatpush.xpose.msrb.mxu0 %v169_v32  ;;  %v142_v9 = vand.u32 4294901760, %v141_v18  ;;  %v459_v32 = vld [vmem:[%s3026_s3 + $0x10] sm:$0xff] }
  0x52   :  { %300 = vmatmul.f32.vlgmr.msra.gmra.mxu2 %v141_v18 }
  0x53   :  { %v143_v15 = vsub.f32 %v141_v18, %v142_v9  ;;  %339 = vmatmul.f32.vlgmr.msra.gmra.mxu3 %v142_v9  ;;  %v1948_v9 = vld [vmem:[%s3028_s5 + $0xb8] sm:$0xff] }
  0x55   :  { %417 = vmatpush.xpose.msrb.mxu1 %v2193_v10  ;;  %362 = vmatpush.xpose.msrb.mxu0 %v175_v38  ;;  %v144_v10 = vand.u32 4294901760, %v143_v15  ;;  %v601_v38 = vld [vmem:[%s3028_s5 + $0x38] sm:$0xff]  ;;  %v1975_v15 = vld [vmem:[%s3026_s3 + $0xe0] sm:$0xff] }
  0x57   :  { %145 = vmatmul.f32.vlgmr.msra.gmra.mxu0 %v144_v10 }
  0x59   :  { %419 = vmatpush.xpose.msrb.mxu1 %v2196_v12  ;;  %366 = vmatpush.xpose.msrb.mxu0 %v181_v45  ;;  %v464_v12 = vld [vmem:[%s3026_s3 + $0x38] sm:$0xff]  ;;  %v598_v45 = vld [vmem:[%s3028_s5 + $0x20] sm:$0xff] }
  0x5d   :  { %421 = vmatpush.xpose.msrb.mxu1 %v2216_v20  ;;  %370 = vmatpush.xpose.msrb.mxu0 %v187_v49  ;;  %v2108_v20 = vmov 0   ;;  %v596_v49 = vld [vmem:[%s3028_s5 + $0x10] sm:$0xff] }
  0x5e   :  { %2029 = vset.pattern.permute.xlu0 %v2108_v20  ;;  %2030 = vset.pattern.permute.xlu1 %v2108_v20 }
  0x5f   :  { %502 = vperm.xlu0 %2029, %v464_v12   ;;  %492 = vperm.xlu1 %2030, %v462_v19   ;;  %v1974_v12 = vld [vmem:[%s3026_s3 + $0xd8] sm:$0xff] }
  0x60   :  { %2031 = vset.pattern.permute.xlu2 %v2108_v20 }
  0x61   :  { %423 = vmatpush.xpose.msrb.mxu1 %v2235_v28  ;;  %374 = vmatpush.xpose.msrb.mxu0 %v193_v59  ;;  %v461_v28 = vld [vmem:[%s3026_s3 + $0x20] sm:$0xff] }
  0x62   :  { %482 = vperm.xlu2 %2031, %v460_v24   ;;  %v726_v59 = vld [vmem:[%s3030_s7] sm:$0xff] }
  0x63   :  { %v449_v24 = vld [vmem:[%s3025_s2] sm:$0xff] }
  0x65   :  { %425 = vmatpush.xpose.msrb.mxu1 %v2251_v35  ;;  %378 = vmatpush.xpose.msrb.mxu0 %v199_v2  ;;  %v457_v35 = vld [vmem:[%s3026_s3] sm:$0xff]  ;;  %v1868_v2 = vld [vmem:[%s3026_s3 + $0x68] sm:$0xff] }
  0x67   :  { %497 = vperm.xlu0 %2029, %v463_v25   ;;  %487 = vperm.xlu1 %2030, %v461_v28   ;;  %v1945_v25 = vld [vmem:[%s3028_s5 + $0xa0] sm:$0xff]  ;;  %v1972_v28 = vld [vmem:[%s3026_s3 + $0xc8] sm:$0xff] }
  0x69   :  { %427 = vmatpush.xpose.msrb.mxu1 %v2275_v46  ;;  %382 = vmatpush.xpose.msrb.mxu0 %v205_v16  ;;  %v597_v46 = vld [vmem:[%s3028_s5 + $0x18] sm:$0xff]  ;;  %v1865_v16 = vld [vmem:[%s3026_s3 + $0x50] sm:$0xff] }
  0x6a   :  { %477 = vperm.xlu2 %2031, %v459_v32   ;;  %v1971_v32 = vld [vmem:[%s3026_s3 + $0xc0] sm:$0xff] }
  0x6d   :  { %429 = vmatpush.xpose.msrb.mxu1 %v2288_v52  ;;  %386 = vmatpush.xpose.msrb.mxu0 %v211_v29  ;;  %v595_v52 = vld [vmem:[%s3028_s5 + $0x8] sm:$0xff]  ;;  %v1894_v29 = vld [vmem:[%s3028_s5 + $0x78] sm:$0xff] }
  0x6f   :  { %472 = vperm.xlu0 %2029, %v458_v33   ;;  %467 = vperm.xlu1 %2030, %v457_v35   ;;  %v450_v33 = vld [vmem:[%s3025_s2 + $0x8] sm:$0xff] }
  0x70   :  { %v1942_v35 = vld [vmem:[%s3028_s5 + $0x88] sm:$0xff] }
  0x71   :  { %431 = vmatpush.xpose.msrb.mxu1 %v2305_v60  ;;  %390 = vmatpush.xpose.msrb.mxu0 %v217_v36  ;;  %v727_v60 = vld [vmem:[%s3030_s7 + $0x8] sm:$0xff] }
  0x72   :  { %639 = vperm.xlu2 %2031, %v601_v38   ;;  %v1892_v36 = vld [vmem:[%s3028_s5 + $0x68] sm:$0xff]  ;;  %v2001_v38 = vld [vmem:[%s3028_s5 + $0xf0] sm:$0xff] }
  0x75   :  { %433 = vmatpush.xpose.msrb.mxu1 %v2315_v0  ;;  %394 = vmatpush.xpose.msrb.mxu0 %v223_v51  ;;  %v1869_v0 = vld [vmem:[%s3026_s3 + $0x70] sm:$0xff]  ;;  %v1920_v51 = vld [vmem:[%s3026_s3 + $0x98] sm:$0xff] }
  0x77   :  { %634 = vperm.xlu0 %2029, %v600_v39   ;;  %629 = vperm.xlu1 %2030, %v599_v42   ;;  %v2000_v39 = vld [vmem:[%s3028_s5 + $0xe8] sm:$0xff]  ;;  %v451_v42 = vld [vmem:[%s3025_s2 + $0x10] sm:$0xff] }
  0x79   :  { %435 = vmatpush.xpose.msrb.mxu1 %v2331_v6  ;;  %398 = vmatpush.xpose.msrb.mxu0 %v229_v62  ;;  %v1866_v6 = vld [vmem:[%s3026_s3 + $0x58] sm:$0xff] }
  0x7a   :  { %624 = vperm.xlu2 %2031, %v598_v45   ;;  %v1906_v62 = vld [vmem:[%s3030_s7 + $0x18] sm:$0xff]  ;;  %v1960_v45 = vld [vmem:[%s3030_s7 + $0x28] sm:$0xff] }
  0x7d   :  { %437 = vmatpush.xpose.msrb.mxu1 %v2355_v30  ;;  %402 = vmatpush.xpose.msrb.mxu0 %v235_v7  ;;  %v1893_v30 = vld [vmem:[%s3028_s5 + $0x70] sm:$0xff]  ;;  %v1959_v7 = vld [vmem:[%s3030_s7 + $0x20] sm:$0xff] }
  0x7f   :  { %619 = vperm.xlu0 %2029, %v597_v46   ;;  %614 = vperm.xlu1 %2030, %v596_v49   ;;  %v1998_v46 = vld [vmem:[%s3028_s5 + $0xd8] sm:$0xff]  ;;  %v1997_v49 = vld [vmem:[%s3028_s5 + $0xd0] sm:$0xff] }
  0x81   :  { %439 = vmatpush.xpose.msrb.mxu1 %v2368_v41  ;;  %406 = vmatpush.xpose.msrb.mxu0 %v241_v26  ;;  %v1891_v41 = vld [vmem:[%s3028_s5 + $0x60] sm:$0xff] }
  0x82   :  { %609 = vperm.xlu2 %2031, %v595_v52   ;;  %v452_v52 = vld [vmem:[%s3025_s2 + $0x18] sm:$0xff] }
  0x84   :  { %408 = vmatmul.f32.vlgmr.msrb.gmra.mxu0 %v140_v8 }
  0x85   :  { %441 = vmatpush.xpose.msrb.mxu1 %v2384_v54  ;;  %v1918_v54 = vld [vmem:[%s3026_s3 + $0x88] sm:$0xff] }
  0x87   :  { %604 = vperm.xlu0 %2029, %v594_v53   ;;  %730 = vperm.xlu1 %2030, %v726_v59   ;;  %v1976_v53 = vld [vmem:[%s3026_s3 + $0xe8] sm:$0xff]  ;;  %v1995_v59 = vld [vmem:[%s3028_s5 + $0xc0] sm:$0xff] }
  0x89   :  { %443 = vmatpush.xpose.msrb.mxu1 %v2397_v63  ;;  %v1944_v63 = vld [vmem:[%s3028_s5 + $0x98] sm:$0xff] }
  0x8a   :  { %735 = vperm.xlu2 %2031, %v727_v60   ;;  %v2013_v60 = vld [vmem:[%s3030_s7 + $0x30] sm:$0xff] }
  0x8c   :  { %445 = vmatmul.f32.vlgmr.msrb.gmra.mxu1 %v140_v8 }
  0x8f   :  { %835 = vperm.xlu0 %2029, %v1870_v61   ;;  %830 = vperm.xlu1 %2030, %v1869_v0   ;;  %v453_v61 = vld [vmem:[%s3025_s2 + $0x20] sm:$0xff]  ;;  %v1973_v0 = vld [vmem:[%s3026_s3 + $0xd0] sm:$0xff] }
  0x92   :  { %825 = vperm.xlu2 %2031, %v1868_v2   ;;  %v1789_v2 = vld [vmem:[%s3031_s8] sm:$0xff] }
  0x97   :  { %820 = vperm.xlu0 %2029, %v1867_v3   ;;  %815 = vperm.xlu1 %2030, %v1866_v6   ;;  %v1796_v3 = vld [vmem:[%s3032_s9] sm:$0xff]  ;;  %v454_v6 = vld [vmem:[%s3025_s2 + $0x28] sm:$0xff] }
  0x9a   :  { %810 = vperm.xlu2 %2031, %v1865_v16   ;;  %v2002_v16 = vld [vmem:[%s3028_s5 + $0xf8] sm:$0xff] }
  0x9f   :  { %805 = vperm.xlu0 %2029, %v1864_v17   ;;  %800 = vperm.xlu1 %2030, %v1863_v23   ;;  %v455_v17 = vld [vmem:[%s3025_s2 + $0x30] sm:$0xff]  ;;  %v1999_v23 = vld [vmem:[%s3028_s5 + $0xe0] sm:$0xff] }
  0xa2   :  { %974 = vperm.xlu2 %2031, %v1894_v29   ;;  %v456_v29 = vld [vmem:[%s3025_s2 + $0x38] sm:$0xff] }
  0xa7   :  { %969 = vperm.xlu0 %2029, %v1893_v30   ;;  %964 = vperm.xlu1 %2030, %v1892_v36   ;;  %v1996_v30 = vld [vmem:[%s3028_s5 + $0xc8] sm:$0xff]  ;;  %v2014_v36 = vld [vmem:[%s3030_s7 + $0x38] sm:$0xff]  ;;  %s2110_s5 = smov [#allocation2]  }
  0xa8   :  { %s1810_s7 = sshll.u32 %s2110_s5, 4  ;;  %s1811_s7 = int_to_ptr.vmem [resolvable:$true] %s1810_s7 }
  0xaa   :  { %959 = vperm.xlu2 %2031, %v1891_v41  }
  0xaf   :  { %954 = vperm.xlu0 %2029, %v1890_v37   ;;  %949 = vperm.xlu1 %2030, %v1889_v40  }
  0xb2   :  { %944 = vperm.xlu2 %2031, %v1888_v56  }
  0xb7   :  { %939 = vperm.xlu0 %2029, %v1887_v43   ;;  %1066 = vperm.xlu1 %2030, %v1905_v44  }
  0xba   :  { %1071 = vperm.xlu2 %2031, %v1906_v62  }
  0xbf   :  { %1171 = vperm.xlu0 %2029, %v1924_v47   ;;  %1166 = vperm.xlu1 %2030, %v1923_v48  }
  0xc2   :  { %1161 = vperm.xlu2 %2031, %v1922_v4  }
  0xc7   :  { %1156 = vperm.xlu0 %2029, %v1921_v50   ;;  %1151 = vperm.xlu1 %2030, %v1920_v51  }
  0xca   :  { %1146 = vperm.xlu2 %2031, %v1919_v27  }
  0xcc   :  { %v247_v11 = vpop.f32.mrf.mxu1 }
  0xcf   :  { %1141 = vperm.xlu0 %2029, %v1918_v54   ;;  %1136 = vperm.xlu1 %2030, %v1917_v55   ;;  %v483_v54 = vpop.permute.xlu2 %482 }
  0xd1   :  { %v503_v48 = vpop.permute.xlu0 %502  ;;  %v493_v50 = vpop.permute.xlu1 %492 }
  0xd2   :  { %1310 = vperm.xlu2 %2031, %v1948_v9  }
  0xd4   :  { %v146_v21 = vpop.f32.mrf.mxu0 }
  0xd5   :  { %v248_v22 = vadd.f32 %v247_v11, %v146_v21  ;;  %v301_v26 = vpop.f32.mrf.mxu2 }
  0xd6   :  { %v340_v14 = vpop.f32.mrf.mxu3 }
  0xd7   :  { %1305 = vperm.xlu0 %2029, %v1947_v57   ;;  %1300 = vperm.xlu1 %2030, %v1946_v58   ;;  %v302_v34 = vadd.f32 %v301_v26, %v248_v22  ;;  %v478_v22 = vpop.permute.xlu2 %477 }
  0xd9   :  { %v341_v8 = vadd.f32 %v340_v14, %v302_v34  ;;  %v498_v55 = vpop.permute.xlu0 %497  ;;  %v488_v57 = vpop.permute.xlu1 %487 }
  0xda   :  { %1295 = vperm.xlu2 %2031, %v1945_v25  }
  0xdf   :  { %1290 = vperm.xlu0 %2029, %v1944_v63   ;;  %1285 = vperm.xlu1 %2030, %v1943_v1  }
  0xe1   :  { %v473_v34 = vpop.permute.xlu0 %472 }
  0xe2   :  { %1280 = vperm.xlu2 %2031, %v1942_v35   ;;  %v587_v35 = vld [vmem:[%s3027_s4 + $0x8] sm:$0xff] }
  0xe7   :  { %1275 = vperm.xlu0 %2029, %v1941_v5   ;;  %1402 = vperm.xlu1 %2030, %v1959_v7  }
  0xea   :  { %1407 = vperm.xlu2 %2031, %v1960_v45   ;;  %v591_v45 = vld [vmem:[%s3027_s4 + $0x28] sm:$0xff] }
  0xef   :  { %1507 = vperm.xlu0 %2029, %v1978_v31   ;;  %1502 = vperm.xlu1 %2030, %v1977_v13  }
  0xf2   :  { %1497 = vperm.xlu2 %2031, %v1976_v53  }
  0xf7   :  { %1492 = vperm.xlu0 %2029, %v1975_v15   ;;  %1487 = vperm.xlu1 %2030, %v1974_v12  }
  0xfa   :  { %1482 = vperm.xlu2 %2031, %v1973_v0  }
  0xff   :  { %1477 = vperm.xlu0 %2029, %v1972_v28   ;;  %1472 = vperm.xlu1 %2030, %v1971_v32  }
 0x101   :  { %v409_v18 = vpop.f32.mrf.mxu0 }
 0x102   :  { %v410_v10 = vadd.f32 %v409_v18, %v341_v8  ;;  %1646 = vperm.xlu2 %2031, %v2002_v16   ;;  %v468_v18 = vpop.permute.xlu1 %467 }
 0x107   :  { %1641 = vperm.xlu0 %2029, %v2001_v38   ;;  %1636 = vperm.xlu1 %2030, %v2000_v39   ;;  %v588_v38 = vld [vmem:[%s3027_s4 + $0x10] sm:$0xff]  ;;  %v589_v39 = vld [vmem:[%s3027_s4 + $0x18] sm:$0xff] }
 0x109   :  { %v446_v19 = vpop.f32.mrf.mxu1 }
 0x10a   :  { %v2644_v20 = vadd.f32 %v446_v19, %v410_v10  ;;  %1631 = vperm.xlu2 %2031, %v1999_v23   ;;  %v630_v16 = vpop.permute.xlu1 %629 }
 0x10c   :  { %544 = vmatpush.msrb.mxu2 %v2644_v20 }
 0x10d   :  { %1837 = vmatmul.msk.f32.vlgmr.msrb.gmra.mxu2 %vm56_vm0, %v449_v24 }
 0x10f   :  { %1626 = vperm.xlu0 %2029, %v1998_v46   ;;  %1621 = vperm.xlu1 %2030, %v1997_v49   ;;  %v592_v46 = vld [vmem:[%s3027_s4 + $0x30] sm:$0xff]  ;;  %v593_v49 = vld [vmem:[%s3027_s4 + $0x38] sm:$0xff] }
 0x112   :  { %1616 = vperm.xlu2 %2031, %v1996_v30  }
 0x115   :  { %1838 = vmatmul.msk.f32.gmra.mxu2 %vm56_vm0, %v450_v33  ;;  %v586_v33 = vld [vmem:[%s3027_s4] sm:$0xff] }
 0x117   :  { %1611 = vperm.xlu0 %2029, %v1995_v59   ;;  %1738 = vperm.xlu1 %2030, %v2013_v60  }
 0x11a   :  { %1743 = vperm.xlu2 %2031, %v2014_v36  }
 0x11d   :  { %1839 = vmatmul.msk.f32.gmra.mxu2 %vm56_vm0, %v451_v42  ;;  %v590_v42 = vld [vmem:[%s3027_s4 + $0x20] sm:$0xff] }
 0x11f   :  { %1792 = vperm.xlu0 %2029, %v1789_v2   ;;  %1799 = vperm.xlu1 %2030, %v1796_v3   ;;  %v640_v2 = vpop.permute.xlu2 %639  ;;  %v635_v3 = vpop.permute.xlu0 %634 }
 0x125   :  { %1840 = vmatmul.msk.f32.gmra.mxu2 %vm56_vm0, %v452_v52 }
 0x12d   :  { %1841 = vmatmul.msk.f32.gmra.mxu2 %vm56_vm0, %v453_v61 }
 0x135   :  { %1842 = vmatmul.msk.f32.gmra.mxu2 %vm56_vm0, %v454_v6 }
 0x13d   :  { %1843 = vmatmul.msk.f32.gmra.mxu2 %vm56_vm0, %v455_v17  ;;  %v625_v17 = vpop.permute.xlu2 %624 }
 0x145   :  { %1844 = vmatmul.msk.f32.gmra.mxu2 %vm56_vm0, %v456_v29  ;;  %v620_v29 = vpop.permute.xlu0 %619 }
 0x190   :  { %v546_v37 = vpop.f32.mrf.mxu2 }
 0x191   :  { %v547_v9 = vadd.f32 %v546_v37, %v468_v18 }
 0x193   :  { %v570_v24 = vmul.f32 0.01, %v547_v9 }
 0x195   :  { %v578_v32 = vmax.f32 %v547_v9, %v570_v24 }
 0x198   :  { %v549_v40 = vpop.f32.mrf.mxu2 }
 0x199   :  { %v550_v13 = vadd.f32 %v549_v40, %v473_v34  ;;  %v725_v34 = vld [vmem:[%s3029_s6 + $0x8] sm:$0xff] }
 0x19b   :  { %v571_v12 = vmul.f32 0.01, %v550_v13 }
 0x19d   :  { %v579_v28 = vmax.f32 %v550_v13, %v571_v12 }
 0x1a0   :  { %v552_v41 = vpop.f32.mrf.mxu2 }
 0x1a1   :  { %v553_v26 = vadd.f32 %v552_v41, %v478_v22 }
 0x1a3   :  { %v572_v15 = vmul.f32 0.01, %v553_v26 }
 0x1a5   :  { %v580_v25 = vmax.f32 %v553_v26, %v572_v15 }
 0x1a8   :  { %v555_v43 = vpop.f32.mrf.mxu2 }
 0x1a9   :  { %v556_v7 = vadd.f32 %v555_v43, %v483_v54 }
 0x1ab   :  { %v573_v14 = vmul.f32 0.01, %v556_v7 }
 0x1ad   :  { %v581_v19 = vmax.f32 %v556_v7, %v573_v14 }
 0x1b0   :  { %v558_v44 = vpop.f32.mrf.mxu2 }
 0x1b1   :  { %v559_v1 = vadd.f32 %v558_v44, %v488_v57 }
 0x1b3   :  { %v574_v27 = vmul.f32 0.01, %v559_v1 }
 0x1b5   :  { %v582_v10 = vmax.f32 %v559_v1, %v574_v27 }
 0x1b8   :  { %v561_v47 = vpop.f32.mrf.mxu2 }
 0x1b9   :  { %v562_v62 = vadd.f32 %v561_v47, %v493_v50  ;;  %v615_v50 = vpop.permute.xlu1 %614 }
 0x1bb   :  { %v575_v11 = vmul.f32 0.01, %v562_v62 }
 0x1bd   :  { %v583_v8 = vmax.f32 %v562_v62, %v575_v11 }
 0x1c0   :  { %v564_v51 = vpop.f32.mrf.mxu2 }
 0x1c1   :  { %v565_v56 = vadd.f32 %v564_v51, %v498_v55  ;;  %v731_v13 = vpop.permute.xlu1 %730 }
 0x1c3   :  { %v576_v4 = vmul.f32 0.01, %v565_v56 }
 0x1c5   :  { %v584_v31 = vmax.f32 %v565_v56, %v576_v4  ;;  %v610_v56 = vpop.permute.xlu2 %609 }
 0x1c8   :  { %v567_v58 = vpop.f32.mrf.mxu2 }
 0x1c9   :  { %v568_v63 = vadd.f32 %v567_v58, %v503_v48 }
 0x1cb   :  { %v577_v5 = vmul.f32 0.01, %v568_v63 }
 0x1cd   :  { %v585_v21 = vmax.f32 %v568_v63, %v577_v5  ;;  %v605_v63 = vpop.permute.xlu0 %604  ;;  %v736_v15 = vpop.permute.xlu2 %735 }
 0x1cf   :  { %675 = vmatpush.msrb.mxu3 %v585_v21 }
 0x1d1   :  { %676 = vmatpush.msrb.mxu3 %v584_v31  ;;  %v724_v31 = vld [vmem:[%s3029_s6] sm:$0xff] }
 0x1d3   :  { %677 = vmatpush.msrb.mxu3 %v583_v8 }
 0x1d5   :  { %678 = vmatpush.msrb.mxu3 %v582_v10 }
 0x1d7   :  { %679 = vmatpush.msrb.mxu3 %v581_v19 }
 0x1d9   :  { %680 = vmatpush.msrb.mxu3 %v580_v25 }
 0x1db   :  { %681 = vmatpush.msrb.mxu3 %v579_v28 }
 0x1dd   :  { %682 = vmatpush.msrb.mxu3 %v578_v32  ;;  %v1855_v32 = vld [vmem:[%s3025_s2 + $0x40] sm:$0xff] }
 0x1de   :  { %1845 = vmatmul.msk.f32.vlgmr.msrb.gmra.mxu3 %vm642_vm1, %v586_v33  ;;  %v1860_v33 = vld [vmem:[%s3025_s2 + $0x68] sm:$0xff] }
 0x1e6   :  { %1846 = vmatmul.msk.f32.gmra.mxu3 %vm642_vm1, %v587_v35  ;;  %v1861_v35 = vld [vmem:[%s3025_s2 + $0x70] sm:$0xff] }
 0x1ee   :  { %1847 = vmatmul.msk.f32.gmra.mxu3 %vm642_vm1, %v588_v38  ;;  %v1857_v38 = vld [vmem:[%s3025_s2 + $0x50] sm:$0xff] }
 0x1f6   :  { %1848 = vmatmul.msk.f32.gmra.mxu3 %vm642_vm1, %v589_v39  ;;  %v1862_v39 = vld [vmem:[%s3025_s2 + $0x78] sm:$0xff] }
 0x1fe   :  { %1849 = vmatmul.msk.f32.gmra.mxu3 %vm642_vm1, %v590_v42  ;;  %v1858_v42 = vld [vmem:[%s3025_s2 + $0x58] sm:$0xff] }
 0x206   :  { %1850 = vmatmul.msk.f32.gmra.mxu3 %vm642_vm1, %v591_v45  ;;  %v1859_v45 = vld [vmem:[%s3025_s2 + $0x60] sm:$0xff] }
 0x20e   :  { %1851 = vmatmul.msk.f32.gmra.mxu3 %vm642_vm1, %v592_v46 }
 0x216   :  { %1852 = vmatmul.msk.f32.gmra.mxu3 %vm642_vm1, %v593_v49 }
 0x261   :  { %v684_v52 = vpop.f32.mrf.mxu3 }
 0x262   :  { %v685_v1 = vadd.f32 %v684_v52, %v605_v63 }
 0x264   :  { %v708_v21 = vmul.f32 0.01, %v685_v1 }
 0x266   :  { %v716_v27 = vmax.f32 %v685_v1, %v708_v21 }
 0x269   :  { %v687_v53 = vpop.f32.mrf.mxu3 }
 0x26a   :  { %v688_v57 = vadd.f32 %v687_v53, %v610_v56  ;;  %v836_v53 = vpop.permute.xlu0 %835 }
 0x26c   :  { %v709_v7 = vmul.f32 0.01, %v688_v57 }
 0x26e   :  { %v717_v26 = vmax.f32 %v688_v57, %v709_v7 }
 0x271   :  { %v690_v59 = vpop.f32.mrf.mxu3 }
 0x272   :  { %v691_v51 = vadd.f32 %v690_v59, %v615_v50 }
 0x274   :  { %v710_v4 = vmul.f32 0.01, %v691_v51 }
 0x276   :  { %v718_v22 = vmax.f32 %v691_v51, %v710_v4 }
 0x279   :  { %v693_v60 = vpop.f32.mrf.mxu3 }
 0x27a   :  { %v694_v44 = vadd.f32 %v693_v60, %v620_v29  ;;  %v831_v60 = vpop.permute.xlu1 %830 }
 0x27c   :  { %v711_v58 = vmul.f32 0.01, %v694_v44 }
 0x27e   :  { %v719_v11 = vmax.f32 %v694_v44, %v711_v58 }
 0x281   :  { %v696_v61 = vpop.f32.mrf.mxu3 }
 0x282   :  { %v697_v40 = vadd.f32 %v696_v61, %v625_v17  ;;  %v821_v17 = vpop.permute.xlu0 %820 }
 0x284   :  { %v712_v54 = vmul.f32 0.01, %v697_v40 }
 0x286   :  { %v720_v5 = vmax.f32 %v697_v40, %v712_v54 }
 0x289   :  { %v699_v0 = vpop.f32.mrf.mxu3 }
 0x28a   :  { %v700_v36 = vadd.f32 %v699_v0, %v630_v16  ;;  %v806_v54 = vpop.permute.xlu0 %805 }
 0x28c   :  { %v713_v47 = vmul.f32 0.01, %v700_v36 }
 0x28e   :  { %v721_v62 = vmax.f32 %v700_v36, %v713_v47  ;;  %v816_v36 = vpop.permute.xlu1 %815 }
 0x291   :  { %v702_v6 = vpop.f32.mrf.mxu3 }
 0x292   :  { %v703_v23 = vadd.f32 %v702_v6, %v635_v3 }
 0x294   :  { %v714_v41 = vmul.f32 0.01, %v703_v23 }
 0x296   :  { %v722_v55 = vmax.f32 %v703_v23, %v714_v41  ;;  %v801_v58 = vpop.permute.xlu1 %800 }
 0x299   :  { %v705_v30 = vpop.f32.mrf.mxu3 }
 0x29a   :  { %v706_v37 = vadd.f32 %v705_v30, %v640_v2  ;;  %v826_v2 = vpop.permute.xlu2 %825 }
 0x29c   :  { %v715_v43 = vmul.f32 0.01, %v706_v37 }
 0x29e   :  { %v723_v48 = vmax.f32 %v706_v37, %v715_v43 }
 0x2a0   :  { %752 = vmatpush.msra.mxu2 %v723_v48 }
 0x2a2   :  { %753 = vmatpush.msra.mxu2 %v722_v55  ;;  %v811_v47 = vpop.permute.xlu2 %810 }
 0x2a4   :  { %754 = vmatpush.msra.mxu2 %v721_v62 }
 0x2a6   :  { %755 = vmatpush.msra.mxu2 %v720_v5 }
 0x2a8   :  { %756 = vmatpush.msra.mxu2 %v719_v11 }
 0x2aa   :  { %757 = vmatpush.msra.mxu2 %v718_v22 }
 0x2ac   :  { %758 = vmatpush.msra.mxu2 %v717_v26  ;;  %v1879_v26 = vld [vmem:[%s3027_s4 + $0x40] sm:$0xff] }
 0x2ae   :  { %759 = vmatpush.msra.mxu2 %v716_v27  ;;  %v1885_v27 = vld [vmem:[%s3027_s4 + $0x70] sm:$0xff] }
 0x2af   :  { %1853 = vmatmul.msk.f32.vlgmr.msra.gmra.mxu2 %vm642_vm1, %v724_v31  ;;  %v1880_v31 = vld [vmem:[%s3027_s4 + $0x48] sm:$0xff] }
 0x2b7   :  { %1854 = vmatmul.msk.f32.gmra.mxu2 %vm642_vm1, %v725_v34  ;;  %v1886_v34 = vld [vmem:[%s3027_s4 + $0x78] sm:$0xff] }
 0x332   :  { %v761_v14 = vpop.f32.mrf.mxu2 }
 0x333   :  { %v762_v8 = vadd.f32 %v761_v14, %v731_v13  ;;  %v1881_v13 = vld [vmem:[%s3027_s4 + $0x50] sm:$0xff]  ;;  %v1882_v14 = vld [vmem:[%s3027_s4 + $0x58] sm:$0xff] }
 0x335   :  { %2032 = vtanh.f32 %v762_v8  ;;  %v1883_v8 = vld [vmem:[%s3027_s4 + $0x60] sm:$0xff] }
 0x33a   :  { %v764_v18 = vpop.f32.mrf.mxu2 }
 0x33b   :  { %v2776_v9 = vpop.eup %2032  ;;  %v765_v12 = vadd.f32 %v764_v18, %v736_v15  ;;  %v1884_v18 = vld [vmem:[%s3027_s4 + $0x68] sm:$0xff] }
 0x33c   :  { %v769_v10 = vmul.f32 1.442695, %v2776_v9 }
 0x33e   :  { %2034 = vpow2.f32 %v769_v10 }
 0x33f   :  { %2036 = vtanh.f32 %v765_v12 }
 0x344   :  { %v2035_v19 = vpop.eup %2034 }
 0x345   :  { %v771_v24 = vmul.f32 %v2035_v19, %v2644_v20  ;;  %v2037_v25 = vpop.eup %2036  ;;  %v1856_v20 = vld [vmem:[%s3025_s2 + $0x48] sm:$0xff]  ;;  %v970_v19 = vpop.permute.xlu0 %969 }
 0x347   :  { %v2780_v28 = vadd.f32 %v2037_v25, %v771_v24  ;;  %v975_v25 = vpop.permute.xlu2 %974 }
 0x349   :  { %877 = vmatpush.msra.mxu0 %v2780_v28  ;;  %2017 = vmatpush.msra.mxu3 %v2780_v28 }
 0x34a   :  { %1871 = vmatmul.msk.f32.vlgmr.msra.gmra.mxu0 %vm56_vm0, %v1855_v32  ;;  %1876 = vmatmul.msk.f32.vlgmr.msra.gmra.mxu3 %vm56_vm0, %v1860_v33 }
 0x352   :  { %1872 = vmatmul.msk.f32.gmra.mxu0 %vm56_vm0, %v1856_v20  ;;  %1877 = vmatmul.msk.f32.gmra.mxu3 %vm56_vm0, %v1861_v35 }
 0x35a   :  { %1873 = vmatmul.msk.f32.gmra.mxu0 %vm56_vm0, %v1857_v38  ;;  %1878 = vmatmul.msk.f32.gmra.mxu3 %vm56_vm0, %v1862_v39 }
 0x362   :  { %1874 = vmatmul.msk.f32.gmra.mxu0 %vm56_vm0, %v1858_v42 }
 0x36a   :  { %1875 = vmatmul.msk.f32.gmra.mxu0 %vm56_vm0, %v1859_v45 }
 0x3c7   :  { %v879_v46 = vpop.f32.mrf.mxu0 }
 0x3c8   :  { %v880_v62 = vadd.f32 %v879_v46, %v801_v58  ;;  %v965_v46 = vpop.permute.xlu1 %964  ;;  %v773_v58 = vrot.slane %v2776_v9, 4 }
 0x3ca   :  { %v903_v7 = vmul.f32 0.01, %v880_v62 }
 0x3cc   :  { %v911_v22 = vmax.f32 %v880_v62, %v903_v7 }
 0x3cd   :  { %v894_v49 = vpop.f32.mrf.mxu3 }
 0x3ce   :  { %v895_v6 = vadd.f32 %v894_v49, %v826_v2 }
 0x3cf   :  { %v882_v52 = vpop.f32.mrf.mxu0 }
 0x3d0   :  { %v908_v37 = vmul.f32 0.01, %v895_v6  ;;  %v883_v55 = vadd.f32 %v882_v52, %v806_v54  ;;  %v960_v52 = vpop.permute.xlu2 %959  ;;  %v950_v2 = vpop.permute.xlu1 %949  ;;  %v1903_v54 = vld [vmem:[%s3029_s6 + $0x10] sm:$0xff] }
 0x3d2   :  { %v916_v43 = vmax.f32 %v895_v6, %v908_v37  ;;  %v904_v4 = vmul.f32 0.01, %v883_v55 }
 0x3d4   :  { %v912_v21 = vmax.f32 %v883_v55, %v904_v4  ;;  %v1904_v55 = vld [vmem:[%s3029_s6 + $0x18] sm:$0xff] }
 0x3d5   :  { %v897_v59 = vpop.f32.mrf.mxu3 }
 0x3d6   :  { %v898_v0 = vadd.f32 %v897_v59, %v831_v60 }
 0x3d7   :  { %v885_v61 = vpop.f32.mrf.mxu0 }
 0x3d8   :  { %v909_v29 = vmul.f32 0.01, %v898_v0  ;;  %v886_v50 = vadd.f32 %v885_v61, %v811_v47 }
 0x3da   :  { %v917_v41 = vmax.f32 %v898_v0, %v909_v29  ;;  %v905_v63 = vmul.f32 0.01, %v886_v50 }
 0x3dc   :  { %v913_v11 = vmax.f32 %v886_v50, %v905_v63  ;;  %v774_v63 = vadd.f32 %v2776_v9, %v773_v58 }
 0x3dd   :  { %v900_v3 = vpop.f32.mrf.mxu3 }
 0x3de   :  { %v901_v16 = vadd.f32 %v900_v3, %v836_v53  ;;  %v955_v53 = vpop.permute.xlu0 %954  ;;  %v775_v4 = vrot.slane %v774_v63, 2 }
 0x3df   :  { %v888_v23 = vpop.f32.mrf.mxu0 }
 0x3e0   :  { %v910_v30 = vmul.f32 0.01, %v901_v16  ;;  %v889_v44 = vadd.f32 %v888_v23, %v816_v36 }
 0x3e2   :  { %v918_v40 = vmax.f32 %v901_v16, %v910_v30  ;;  %v906_v56 = vmul.f32 0.01, %v889_v44 }
 0x3e4   :  { %1009 = vmatpush.msra.mxu1 %v918_v40  ;;  %2018 = vmatpush.msrb.mxu2 %v918_v40  ;;  %v914_v5 = vmax.f32 %v889_v44, %v906_v56  ;;  %v1067_v56 = vpop.permute.xlu1 %1066 }
 0x3e6   :  { %1010 = vmatpush.msra.mxu1 %v917_v41  ;;  %2019 = vmatpush.msrb.mxu2 %v917_v41  ;;  %v940_v36 = vpop.permute.xlu0 %939 }
 0x3e7   :  { %v891_v48 = vpop.f32.mrf.mxu0 }
 0x3e8   :  { %v892_v51 = vadd.f32 %v891_v48, %v821_v17  ;;  %1011 = vmatpush.msra.mxu1 %v916_v43  ;;  %2020 = vmatpush.msrb.mxu2 %v916_v43  ;;  %v945_v17 = vpop.permute.xlu2 %944 }
 0x3ea   :  { %v907_v57 = vmul.f32 0.01, %v892_v51 }
 0x3ec   :  { %v915_v1 = vmax.f32 %v892_v51, %v907_v57 }
 0x3ee   :  { %1012 = vmatpush.msra.mxu1 %v915_v1  ;;  %2021 = vmatpush.msrb.mxu2 %v915_v1 }
 0x3f0   :  { %1013 = vmatpush.msra.mxu1 %v914_v5  ;;  %2022 = vmatpush.msrb.mxu2 %v914_v5  ;;  %v1072_v7 = vpop.permute.xlu2 %1071 }
 0x3f2   :  { %1014 = vmatpush.msra.mxu1 %v913_v11  ;;  %2023 = vmatpush.msrb.mxu2 %v913_v11 }
 0x3f4   :  { %1015 = vmatpush.msra.mxu1 %v912_v21  ;;  %2024 = vmatpush.msrb.mxu2 %v912_v21 }
 0x3f6   :  { %1016 = vmatpush.msra.mxu1 %v911_v22  ;;  %2025 = vmatpush.msrb.mxu2 %v911_v22 }
 0x3f7   :  { %1895 = vmatmul.msk.f32.vlgmr.msra.gmra.mxu1 %vm642_vm1, %v1879_v26  ;;  %1901 = vmatmul.msk.f32.vlgmr.msrb.gmra.mxu2 %vm642_vm1, %v1885_v27  ;;  %v776_v26 = vadd.f32 %v775_v4, %v774_v63 }
 0x3ff   :  { %1896 = vmatmul.msk.f32.gmra.mxu1 %vm642_vm1, %v1880_v31  ;;  %1902 = vmatmul.msk.f32.gmra.mxu2 %vm642_vm1, %v1886_v34  ;;  %v777_v34 = vrot.slane %v776_v26, 1 }
 0x401   :  { %v778_v9 = vadd.f32 %v777_v34, %v776_v26  ;;  %v1936_v26 = vld [vmem:[%s3027_s4 + $0x98] sm:$0xff]  ;;  %v1939_v34 = vld [vmem:[%s3027_s4 + $0xb0] sm:$0xff] }
 0x407   :  { %1897 = vmatmul.msk.f32.gmra.mxu1 %vm642_vm1, %v1881_v13 }
 0x40f   :  { %1898 = vmatmul.msk.f32.gmra.mxu1 %vm642_vm1, %v1882_v14 }
 0x417   :  { %1899 = vmatmul.msk.f32.gmra.mxu1 %vm642_vm1, %v1883_v8 }
 0x41f   :  { %1900 = vmatmul.msk.f32.gmra.mxu1 %vm642_vm1, %v1884_v18 }
 0x474   :  { %v1018_v15 = vpop.f32.mrf.mxu1 }
 0x475   :  { %v1019_v37 = vadd.f32 %v1018_v15, %v940_v36 }
 0x477   :  { %v1042_v47 = vmul.f32 0.01, %v1019_v37 }
 0x479   :  { %v1050_v51 = vmax.f32 %v1019_v37, %v1042_v47 }
 0x47a   :  { %v1036_v10 = vpop.f32.mrf.mxu2 }
 0x47b   :  { %v1037_v24 = vadd.f32 %v1036_v10, %v970_v19  ;;  %v1909_v19 = vld [vmem:[%s3025_s2 + $0x80] sm:$0xff] }
 0x47c   :  { %v1021_v12 = vpop.f32.mrf.mxu1 }
 0x47d   :  { %v1048_v35 = vmul.f32 0.01, %v1037_v24  ;;  %v1022_v23 = vadd.f32 %v1021_v12, %v945_v17 }
 0x47f   :  { %v1056_v42 = vmax.f32 %v1037_v24, %v1048_v35  ;;  %v1043_v43 = vmul.f32 0.01, %v1022_v23  ;;  %v1915_v35 = vld [vmem:[%s3025_s2 + $0xb0] sm:$0xff] }
 0x481   :  { %v1051_v50 = vmax.f32 %v1022_v23, %v1043_v43 }
 0x482   :  { %v1039_v32 = vpop.f32.mrf.mxu2 }
 0x483   :  { %v1040_v33 = vadd.f32 %v1039_v32, %v975_v25  ;;  %v1910_v25 = vld [vmem:[%s3025_s2 + $0x88] sm:$0xff]  ;;  %v1912_v32 = vld [vmem:[%s3025_s2 + $0x98] sm:$0xff] }
 0x484   :  { %v1024_v20 = vpop.f32.mrf.mxu1 }
 0x485   :  { %v1049_v38 = vmul.f32 0.01, %v1040_v33  ;;  %v1025_v3 = vadd.f32 %v1024_v20, %v950_v2  ;;  %v1914_v20 = vld [vmem:[%s3025_s2 + $0xa8] sm:$0xff] }
 0x487   :  { %v1057_v39 = vmax.f32 %v1040_v33, %v1049_v38  ;;  %v1044_v40 = vmul.f32 0.01, %v1025_v3  ;;  %v1913_v33 = vld [vmem:[%s3025_s2 + $0xa0] sm:$0xff]  ;;  %v1916_v38 = vld [vmem:[%s3025_s2 + $0xb8] sm:$0xff] }
 0x489   :  { %1088 = vmatpush.msrb.mxu3 %v1057_v39  ;;  %v1052_v48 = vmax.f32 %v1025_v3, %v1044_v40 }
 0x48b   :  { %1089 = vmatpush.msrb.mxu3 %v1056_v42 }
 0x48c   :  { %v1027_v45 = vpop.f32.mrf.mxu1 }
 0x48d   :  { %v1028_v61 = vadd.f32 %v1027_v45, %v955_v53  ;;  %v1172_v53 = vpop.permute.xlu0 %1171 }
 0x48f   :  { %v1045_v29 = vmul.f32 0.01, %v1028_v61 }
 0x491   :  { %v1053_v44 = vmax.f32 %v1028_v61, %v1045_v29  ;;  %v1162_v61 = vpop.permute.xlu2 %1161 }
 0x494   :  { %v1030_v49 = vpop.f32.mrf.mxu1 }
 0x495   :  { %v1031_v59 = vadd.f32 %v1030_v49, %v960_v52 }
 0x497   :  { %v1046_v6 = vmul.f32 0.01, %v1031_v59 }
 0x499   :  { %v1054_v41 = vmax.f32 %v1031_v59, %v1046_v6  ;;  %v1167_v59 = vpop.permute.xlu1 %1166 }
 0x49c   :  { %v1033_v60 = vpop.f32.mrf.mxu1 }
 0x49d   :  { %v1034_v0 = vadd.f32 %v1033_v60, %v965_v46 }
 0x49f   :  { %v1047_v16 = vmul.f32 0.01, %v1034_v0 }
 0x4a1   :  { %v1055_v30 = vmax.f32 %v1034_v0, %v1047_v16  ;;  %v1157_v0 = vpop.permute.xlu0 %1156  ;;  %v1152_v3 = vpop.permute.xlu1 %1151 }
 0x4a3   :  { %1090 = vmatpush.msrb.mxu3 %v1055_v30 }
 0x4a5   :  { %1091 = vmatpush.msrb.mxu3 %v1054_v41  ;;  %v1147_v41 = vpop.permute.xlu2 %1146 }
 0x4a7   :  { %1092 = vmatpush.msrb.mxu3 %v1053_v44 }
 0x4a9   :  { %1093 = vmatpush.msrb.mxu3 %v1052_v48  ;;  %v1142_v48 = vpop.permute.xlu0 %1141 }
 0x4ab   :  { %1094 = vmatpush.msrb.mxu3 %v1051_v50 }
 0x4ad   :  { %1095 = vmatpush.msrb.mxu3 %v1050_v51 }
 0x4ae   :  { %1907 = vmatmul.msk.f32.vlgmr.msrb.gmra.mxu3 %vm642_vm1, %v1903_v54 }
 0x4b6   :  { %1908 = vmatmul.msk.f32.gmra.mxu3 %vm642_vm1, %v1904_v55  ;;  %v1137_v55 = vpop.permute.xlu1 %1136 }
 0x531   :  { %v1097_v57 = vpop.f32.mrf.mxu3 }
 0x532   :  { %v1098_v62 = vadd.f32 %v1097_v57, %v1067_v56 }
 0x534   :  { %2038 = vtanh.f32 %v1098_v62 }
 0x539   :  { %v1100_v1 = vpop.f32.mrf.mxu3 }
 0x53a   :  { %v2039_v5 = vpop.eup %2038  ;;  %v1101_v21 = vadd.f32 %v1100_v1, %v1072_v7 }
 0x53b   :  { %v1105_v11 = vmul.f32 1.442695, %v2039_v5  ;;  %v1109_v22 = vrot.slane %v2039_v5, 4 }
 0x53d   :  { %2040 = vpow2.f32 %v1105_v11  ;;  %v1110_v27 = vadd.f32 %v2039_v5, %v1109_v22  ;;  %v1933_v11 = vld [vmem:[%s3027_s4 + $0x80] sm:$0xff]  ;;  %v1935_v22 = vld [vmem:[%s3027_s4 + $0x90] sm:$0xff] }
 0x53e   :  { %2042 = vtanh.f32 %v1101_v21  ;;  %v1934_v21 = vld [vmem:[%s3027_s4 + $0x88] sm:$0xff] }
 0x53f   :  { %v1111_v31 = vrot.slane %v1110_v27, 2 }
 0x541   :  { %v1112_v13 = vadd.f32 %v1111_v31, %v1110_v27  ;;  %v1937_v27 = vld [vmem:[%s3027_s4 + $0xa0] sm:$0xff]  ;;  %v1938_v31 = vld [vmem:[%s3027_s4 + $0xa8] sm:$0xff] }
 0x543   :  { %v2041_v14 = vpop.eup %2040  ;;  %v1113_v8 = vrot.slane %v1112_v13, 1 }
 0x544   :  { %v1107_v18 = vmul.f32 %v2041_v14, %v2780_v28  ;;  %v2043_v15 = vpop.eup %2042  ;;  %v1911_v28 = vld [vmem:[%s3025_s2 + $0x90] sm:$0xff] }
 0x545   :  { %v1114_v10 = vadd.f32 %v1113_v8, %v1112_v13  ;;  %v1940_v13 = vld [vmem:[%s3027_s4 + $0xb8] sm:$0xff] }
 0x546   :  { %v2859_v12 = vadd.f32 %v2043_v15, %v1107_v18 }
 0x547   :  { %v2864_v24 = vadd.f32 %v1114_v10, %v778_v9 }
 0x548   :  { %1213 = vmatpush.msra.mxu2 %v2859_v12 }
 0x549   :  { %1925 = vmatmul.msk.f32.vlgmr.msra.gmra.mxu2 %vm56_vm0, %v1909_v19  ;;  %v1311_v19 = vpop.permute.xlu2 %1310 }
 0x551   :  { %1926 = vmatmul.msk.f32.gmra.mxu2 %vm56_vm0, %v1910_v25  ;;  %v1306_v25 = vpop.permute.xlu0 %1305 }
 0x559   :  { %1927 = vmatmul.msk.f32.gmra.mxu2 %vm56_vm0, %v1911_v28 }
 0x561   :  { %1928 = vmatmul.msk.f32.gmra.mxu2 %vm56_vm0, %v1912_v32  ;;  %v1301_v32 = vpop.permute.xlu1 %1300 }
 0x569   :  { %1929 = vmatmul.msk.f32.gmra.mxu2 %vm56_vm0, %v1913_v33  ;;  %v1296_v33 = vpop.permute.xlu2 %1295 }
 0x571   :  { %1930 = vmatmul.msk.f32.gmra.mxu2 %vm56_vm0, %v1914_v20 }
 0x579   :  { %1931 = vmatmul.msk.f32.gmra.mxu2 %vm56_vm0, %v1915_v35  ;;  %v1291_v35 = vpop.permute.xlu0 %1290 }
 0x581   :  { %1932 = vmatmul.msk.f32.gmra.mxu2 %vm56_vm0, %v1916_v38 }
 0x5cc   :  { %v1215_v39 = vpop.f32.mrf.mxu2 }
 0x5cd   :  { %v1216_v56 = vadd.f32 %v1215_v39, %v1137_v55 }
 0x5cf   :  { %v1239_v1 = vmul.f32 0.01, %v1216_v56 }
 0x5d1   :  { %v1247_v7 = vmax.f32 %v1216_v56, %v1239_v1 }
 0x5d4   :  { %v1218_v42 = vpop.f32.mrf.mxu2 }
 0x5d5   :  { %v1219_v50 = vadd.f32 %v1218_v42, %v1142_v48  ;;  %v1957_v48 = vld [vmem:[%s3029_s6 + $0x20] sm:$0xff] }
 0x5d7   :  { %v1240_v62 = vmul.f32 0.01, %v1219_v50 }
 0x5d9   :  { %v1248_v5 = vmax.f32 %v1219_v50, %v1240_v62  ;;  %v1958_v50 = vld [vmem:[%s3029_s6 + $0x28] sm:$0xff] }
 0x5dc   :  { %v1221_v45 = vpop.f32.mrf.mxu2 }
 0x5dd   :  { %v1222_v43 = vadd.f32 %v1221_v45, %v1147_v41 }
 0x5df   :  { %v1241_v57 = vmul.f32 0.01, %v1222_v43 }
 0x5e1   :  { %v1249_v4 = vmax.f32 %v1222_v43, %v1241_v57 }
 0x5e4   :  { %v1224_v46 = vpop.f32.mrf.mxu2 }
 0x5e5   :  { %v1225_v36 = vadd.f32 %v1224_v46, %v1152_v3  ;;  %v1281_v3 = vpop.permute.xlu2 %1280 }
 0x5e7   :  { %v1242_v51 = vmul.f32 0.01, %v1225_v36 }
 0x5e9   :  { %v1250_v63 = vmax.f32 %v1225_v36, %v1242_v51 }
 0x5ec   :  { %v1227_v49 = vpop.f32.mrf.mxu2 }
 0x5ed   :  { %v1228_v23 = vadd.f32 %v1227_v49, %v1157_v0 }
 0x5ef   :  { %v1243_v44 = vmul.f32 0.01, %v1228_v23 }
 0x5f1   :  { %v1251_v58 = vmax.f32 %v1228_v23, %v1243_v44  ;;  %v1276_v23 = vpop.permute.xlu0 %1275 }
 0x5f4   :  { %v1230_v52 = vpop.f32.mrf.mxu2 }
 0x5f5   :  { %v1231_v16 = vadd.f32 %v1230_v52, %v1162_v61 }
 0x5f7   :  { %v1244_v37 = vmul.f32 0.01, %v1231_v16 }
 0x5f9   :  { %v1252_v54 = vmax.f32 %v1231_v16, %v1244_v37 }
 0x5fc   :  { %v1233_v60 = vpop.f32.mrf.mxu2 }
 0x5fd   :  { %v1234_v2 = vadd.f32 %v1233_v60, %v1167_v59  ;;  %v1286_v60 = vpop.permute.xlu1 %1285 }
 0x5ff   :  { %v1245_v29 = vmul.f32 0.01, %v1234_v2 }
 0x601   :  { %v1253_v47 = vmax.f32 %v1234_v2, %v1245_v29 }
 0x604   :  { %v1236_v6 = vpop.f32.mrf.mxu2 }
 0x605   :  { %v1237_v17 = vadd.f32 %v1236_v6, %v1172_v53  ;;  %v1403_v51 = vpop.permute.xlu1 %1402 }
 0x607   :  { %v1246_v30 = vmul.f32 0.01, %v1237_v17 }
 0x609   :  { %v1254_v40 = vmax.f32 %v1237_v17, %v1246_v30 }
 0x60b   :  { %1345 = vmatpush.msra.mxu3 %v1254_v40 }
 0x60d   :  { %1346 = vmatpush.msra.mxu3 %v1253_v47 }
 0x60f   :  { %1347 = vmatpush.msra.mxu3 %v1252_v54 }
 0x611   :  { %1348 = vmatpush.msra.mxu3 %v1251_v58  ;;  %v1408_v58 = vpop.permute.xlu2 %1407 }
 0x613   :  { %1349 = vmatpush.msra.mxu3 %v1250_v63 }
 0x615   :  { %1350 = vmatpush.msra.mxu3 %v1249_v4 }
 0x617   :  { %1351 = vmatpush.msra.mxu3 %v1248_v5 }
 0x619   :  { %1352 = vmatpush.msra.mxu3 %v1247_v7 }
 0x61a   :  { %1949 = vmatmul.msk.f32.vlgmr.msra.gmra.mxu3 %vm642_vm1, %v1933_v11 }
 0x622   :  { %1950 = vmatmul.msk.f32.gmra.mxu3 %vm642_vm1, %v1934_v21 }
 0x62a   :  { %1951 = vmatmul.msk.f32.gmra.mxu3 %vm642_vm1, %v1935_v22 }
 0x632   :  { %1952 = vmatmul.msk.f32.gmra.mxu3 %vm642_vm1, %v1936_v26 }
 0x63a   :  { %1953 = vmatmul.msk.f32.gmra.mxu3 %vm642_vm1, %v1937_v27 }
 0x642   :  { %1954 = vmatmul.msk.f32.gmra.mxu3 %vm642_vm1, %v1938_v31 }
 0x64a   :  { %1955 = vmatmul.msk.f32.gmra.mxu3 %vm642_vm1, %v1939_v34  ;;  %v1963_v34 = vld [vmem:[%s3025_s2 + $0xc0] sm:$0xff] }
 0x652   :  { %1956 = vmatmul.msk.f32.gmra.mxu3 %vm642_vm1, %v1940_v13 }
 0x69d   :  { %v1354_v14 = vpop.f32.mrf.mxu3 }
 0x69e   :  { %v1355_v29 = vadd.f32 %v1354_v14, %v1276_v23  ;;  %v1964_v14 = vld [vmem:[%s3025_s2 + $0xc8] sm:$0xff] }
 0x6a0   :  { %v1378_v41 = vmul.f32 0.01, %v1355_v29 }
 0x6a2   :  { %v1386_v47 = vmax.f32 %v1355_v29, %v1378_v41 }
 0x6a5   :  { %v1357_v8 = vpop.f32.mrf.mxu3 }
 0x6a6   :  { %v1358_v6 = vadd.f32 %v1357_v8, %v1281_v3  ;;  %v1967_v8 = vld [vmem:[%s3025_s2 + $0xe0] sm:$0xff] }
 0x6a8   :  { %v1379_v37 = vmul.f32 0.01, %v1358_v6 }
 0x6aa   :  { %v1387_v44 = vmax.f32 %v1358_v6, %v1379_v37 }
 0x6ad   :  { %v1360_v18 = vpop.f32.mrf.mxu3 }
 0x6ae   :  { %v1361_v61 = vadd.f32 %v1360_v18, %v1286_v60  ;;  %v1968_v18 = vld [vmem:[%s3025_s2 + $0xe8] sm:$0xff] }
 0x6b0   :  { %v1380_v30 = vmul.f32 0.01, %v1361_v61 }
 0x6b2   :  { %v1388_v43 = vmax.f32 %v1361_v61, %v1380_v30 }
 0x6b5   :  { %v1363_v15 = vpop.f32.mrf.mxu3 }
 0x6b6   :  { %v1364_v52 = vadd.f32 %v1363_v15, %v1291_v35  ;;  %v1969_v15 = vld [vmem:[%s3025_s2 + $0xf0] sm:$0xff]  ;;  %v1503_v35 = vpop.permute.xlu1 %1502 }
 0x6b8   :  { %v1381_v16 = vmul.f32 0.01, %v1364_v52 }
 0x6ba   :  { %v1389_v40 = vmax.f32 %v1364_v52, %v1381_v16 }
 0x6bd   :  { %v1366_v9 = vpop.f32.mrf.mxu3 }
 0x6be   :  { %v1367_v45 = vadd.f32 %v1366_v9, %v1296_v33  ;;  %v1970_v9 = vld [vmem:[%s3025_s2 + $0xf8] sm:$0xff] }
 0x6c0   :  { %v1382_v0 = vmul.f32 0.01, %v1367_v45 }
 0x6c2   :  { %v1390_v36 = vmax.f32 %v1367_v45, %v1382_v0 }
 0x6c5   :  { %v1369_v10 = vpop.f32.mrf.mxu3 }
 0x6c6   :  { %v1370_v39 = vadd.f32 %v1369_v10, %v1301_v32 }
 0x6c8   :  { %v1383_v53 = vmul.f32 0.01, %v1370_v39 }
 0x6ca   :  { %v1391_v17 = vmax.f32 %v1370_v39, %v1383_v53  ;;  %v1498_v39 = vpop.permute.xlu2 %1497 }
 0x6cd   :  { %v1372_v28 = vpop.f32.mrf.mxu3 }
 0x6ce   :  { %v1373_v20 = vadd.f32 %v1372_v28, %v1306_v25 }
 0x6d0   :  { %v1384_v46 = vmul.f32 0.01, %v1373_v20 }
 0x6d2   :  { %v1392_v2 = vmax.f32 %v1373_v20, %v1384_v46  ;;  %v1508_v20 = vpop.permute.xlu0 %1507  ;;  %v1488_v46 = vpop.permute.xlu1 %1487 }
 0x6d3   :  { %v1483_v6 = vpop.permute.xlu2 %1482 }
 0x6d5   :  { %v1375_v38 = vpop.f32.mrf.mxu3 }
 0x6d6   :  { %v1376_v42 = vadd.f32 %v1375_v38, %v1311_v19 }
 0x6d8   :  { %v1385_v49 = vmul.f32 0.01, %v1376_v42 }
 0x6da   :  { %v1393_v59 = vmax.f32 %v1376_v42, %v1385_v49  ;;  %v1493_v42 = vpop.permute.xlu0 %1492 }
 0x6dc   :  { %1424 = vmatpush.msrb.mxu0 %v1393_v59 }
 0x6de   :  { %1425 = vmatpush.msrb.mxu0 %v1392_v2 }
 0x6e0   :  { %1426 = vmatpush.msrb.mxu0 %v1391_v17 }
 0x6e2   :  { %1427 = vmatpush.msrb.mxu0 %v1390_v36  ;;  %v1478_v29 = vpop.permute.xlu0 %1477 }
 0x6e4   :  { %1428 = vmatpush.msrb.mxu0 %v1389_v40  ;;  %v1473_v40 = vpop.permute.xlu1 %1472 }
 0x6e6   :  { %1429 = vmatpush.msrb.mxu0 %v1388_v43 }
 0x6e8   :  { %1430 = vmatpush.msrb.mxu0 %v1387_v44 }
 0x6ea   :  { %1431 = vmatpush.msrb.mxu0 %v1386_v47 }
 0x6eb   :  { %1961 = vmatmul.msk.f32.vlgmr.msrb.gmra.mxu0 %vm642_vm1, %v1957_v48 }
 0x6f3   :  { %1962 = vmatmul.msk.f32.gmra.mxu0 %vm642_vm1, %v1958_v50 }
 0x768   :  { %v1433_v54 = vpop.f32.mrf.mxu0 }
 0x769   :  { %v1434_v55 = vadd.f32 %v1433_v54, %v1403_v51 }
 0x76b   :  { %2044 = vtanh.f32 %v1434_v55 }
 0x770   :  { %v1436_v56 = vpop.f32.mrf.mxu0 }
 0x771   :  { %v2045_v57 = vpop.eup %2044  ;;  %v1437_v63 = vadd.f32 %v1436_v56, %v1408_v58  ;;  %v1987_v56 = vld [vmem:[%s3027_s4 + $0xc0] sm:$0xff]  ;;  %v1989_v58 = vld [vmem:[%s3027_s4 + $0xd0] sm:$0xff] }
 0x772   :  { %v1441_v62 = vmul.f32 1.442695, %v2045_v57  ;;  %v1445_v1 = vrot.slane %v2045_v57, 4 }
 0x774   :  { %2046 = vpow2.f32 %v1441_v62  ;;  %v1446_v4 = vadd.f32 %v2045_v57, %v1445_v1  ;;  %v1988_v57 = vld [vmem:[%s3027_s4 + $0xc8] sm:$0xff]  ;;  %v1990_v62 = vld [vmem:[%s3027_s4 + $0xd8] sm:$0xff] }
 0x775   :  { %2048 = vtanh.f32 %v1437_v63  ;;  %v1991_v63 = vld [vmem:[%s3027_s4 + $0xe0] sm:$0xff]  ;;  %v1992_v1 = vld [vmem:[%s3027_s4 + $0xe8] sm:$0xff] }
 0x776   :  { %v1447_v5 = vrot.slane %v1446_v4, 2 }
 0x778   :  { %v1448_v7 = vadd.f32 %v1447_v5, %v1446_v4  ;;  %v1993_v4 = vld [vmem:[%s3027_s4 + $0xf0] sm:$0xff]  ;;  %v1994_v5 = vld [vmem:[%s3027_s4 + $0xf8] sm:$0xff] }
 0x77a   :  { %v2047_v11 = vpop.eup %2046  ;;  %v1449_v21 = vrot.slane %v1448_v7, 1 }
 0x77b   :  { %v1443_v22 = vmul.f32 %v2047_v11, %v2859_v12  ;;  %v2049_v26 = vpop.eup %2048  ;;  %v1965_v12 = vld [vmem:[%s3025_s2 + $0xd0] sm:$0xff] }
 0x77c   :  { %v1450_v27 = vadd.f32 %v1449_v21, %v1448_v7 }
 0x77d   :  { %v2937_v31 = vadd.f32 %v2049_v26, %v1443_v22 }
 0x77e   :  { %v2943_v13 = vadd.f32 %v1450_v27, %v2864_v24  ;;  %v1966_v24 = vld [vmem:[%s3025_s2 + $0xd8] sm:$0xff]  ;;  %s1812_s2 = sshll.u32 %s3033_s10, 4  ;;  %s1813_s2 = int_to_ptr.hbm [resolvable:$true] %s1812_s2 }
 0x77f   :  { %1549 = vmatpush.msrb.mxu1 %v2937_v31 }
 0x780   :  { %1979 = vmatmul.msk.f32.vlgmr.msrb.gmra.mxu1 %vm56_vm0, %v1963_v34  ;;  %v1647_v34 = vpop.permute.xlu2 %1646 }
 0x788   :  { %1980 = vmatmul.msk.f32.gmra.mxu1 %vm56_vm0, %v1964_v14  ;;  %v1642_v14 = vpop.permute.xlu0 %1641 }
 0x790   :  { %1981 = vmatmul.msk.f32.gmra.mxu1 %vm56_vm0, %v1965_v12 }
 0x798   :  { %1982 = vmatmul.msk.f32.gmra.mxu1 %vm56_vm0, %v1966_v24  ;;  %v1637_v24 = vpop.permute.xlu1 %1636 }
 0x7a0   :  { %1983 = vmatmul.msk.f32.gmra.mxu1 %vm56_vm0, %v1967_v8  ;;  %v1632_v8 = vpop.permute.xlu2 %1631 }
 0x7a8   :  { %1984 = vmatmul.msk.f32.gmra.mxu1 %vm56_vm0, %v1968_v18 }
 0x7b0   :  { %1985 = vmatmul.msk.f32.gmra.mxu1 %vm56_vm0, %v1969_v15  ;;  %v1627_v15 = vpop.permute.xlu0 %1626 }
 0x7b8   :  { %1986 = vmatmul.msk.f32.gmra.mxu1 %vm56_vm0, %v1970_v9 }
 0x7fd   :  { %v1551_v10 = vpop.f32.mrf.mxu1 }
 0x7fe   :  { %v1552_v41 = vadd.f32 %v1551_v10, %v1473_v40 }
 0x800   :  { %v1575_v50 = vmul.f32 0.01, %v1552_v41 }
 0x802   :  { %v1583_v55 = vmax.f32 %v1552_v41, %v1575_v50 }
 0x805   :  { %v1554_v19 = vpop.f32.mrf.mxu1 }
 0x806   :  { %v1555_v30 = vadd.f32 %v1554_v19, %v1478_v29  ;;  %v2011_v29 = vld [vmem:[%s3029_s6 + $0x30] sm:$0xff] }
 0x808   :  { %v1576_v47 = vmul.f32 0.01, %v1555_v30 }
 0x80a   :  { %v1584_v54 = vmax.f32 %v1555_v30, %v1576_v47  ;;  %v2012_v30 = vld [vmem:[%s3029_s6 + $0x38] sm:$0xff]  ;;  %s2109_s6 = smov [#allocation4]  }
 0x80b   :  { %s1821_s21 = sshll.u32 %s2109_s6, 4  ;;  %s1822_s21 = int_to_ptr.vmem [resolvable:$true] %s1821_s21 }
 0x80d   :  { %v1557_v25 = vpop.f32.mrf.mxu1 }
 0x80e   :  { %v1558_v16 = vadd.f32 %v1557_v25, %v1483_v6 }
 0x810   :  { %v1577_v43 = vmul.f32 0.01, %v1558_v16 }
 0x812   :  { %v1585_v51 = vmax.f32 %v1558_v16, %v1577_v43 }
 0x815   :  { %v1560_v28 = vpop.f32.mrf.mxu1 }
 0x816   :  { %v1561_v0 = vadd.f32 %v1560_v28, %v1488_v46  ;;  %v1617_v46 = vpop.permute.xlu2 %1616 }
 0x818   :  { %v1578_v36 = vmul.f32 0.01, %v1561_v0 }
 0x81a   :  { %v1586_v48 = vmax.f32 %v1561_v0, %v1578_v36 }
 0x81d   :  { %v1563_v32 = vpop.f32.mrf.mxu1 }
 0x81e   :  { %v1564_v59 = vadd.f32 %v1563_v32, %v1493_v42 }
 0x820   :  { %v1579_v17 = vmul.f32 0.01, %v1564_v59 }
 0x822   :  { %v1587_v44 = vmax.f32 %v1564_v59, %v1579_v17  ;;  %v1612_v59 = vpop.permute.xlu0 %1611 }
 0x825   :  { %v1566_v33 = vpop.f32.mrf.mxu1 }
 0x826   :  { %v1567_v52 = vadd.f32 %v1566_v33, %v1498_v39 }
 0x828   :  { %v1580_v2 = vmul.f32 0.01, %v1567_v52 }
 0x82a   :  { %v1588_v37 = vmax.f32 %v1567_v52, %v1580_v2 }
 0x82d   :  { %v1569_v38 = vpop.f32.mrf.mxu1 }
 0x82e   :  { %v1570_v45 = vadd.f32 %v1569_v38, %v1503_v35  ;;  %v1622_v38 = vpop.permute.xlu1 %1621 }
 0x830   :  { %v1581_v60 = vmul.f32 0.01, %v1570_v45 }
 0x832   :  { %v1589_v23 = vmax.f32 %v1570_v45, %v1581_v60 }
 0x835   :  { %v1572_v49 = vpop.f32.mrf.mxu1 }
 0x836   :  { %v1573_v53 = vadd.f32 %v1572_v49, %v1508_v20  ;;  %v1739_v36 = vpop.permute.xlu1 %1738 }
 0x838   :  { %v1582_v61 = vmul.f32 0.01, %v1573_v53 }
 0x83a   :  { %v1590_v3 = vmax.f32 %v1573_v53, %v1582_v61 }
 0x83c   :  { %1681 = vmatpush.msra.mxu0 %v1590_v3 }
 0x83e   :  { %1682 = vmatpush.msra.mxu0 %v1589_v23 }
 0x840   :  { %1683 = vmatpush.msra.mxu0 %v1588_v37 }
 0x842   :  { %1684 = vmatpush.msra.mxu0 %v1587_v44  ;;  %v1744_v44 = vpop.permute.xlu2 %1743 }
 0x844   :  { %1685 = vmatpush.msra.mxu0 %v1586_v48 }
 0x846   :  { %1686 = vmatpush.msra.mxu0 %v1585_v51 }
 0x848   :  { %1687 = vmatpush.msra.mxu0 %v1584_v54 }
 0x84a   :  { %1688 = vmatpush.msra.mxu0 %v1583_v55 }
 0x84b   :  { %2003 = vmatmul.msk.f32.vlgmr.msra.gmra.mxu0 %vm642_vm1, %v1987_v56 }
 0x853   :  { %2004 = vmatmul.msk.f32.gmra.mxu0 %vm642_vm1, %v1988_v57 }
 0x85b   :  { %2005 = vmatmul.msk.f32.gmra.mxu0 %vm642_vm1, %v1989_v58 }
 0x863   :  { %2006 = vmatmul.msk.f32.gmra.mxu0 %vm642_vm1, %v1990_v62 }
 0x86b   :  { %2007 = vmatmul.msk.f32.gmra.mxu0 %vm642_vm1, %v1991_v63 }
 0x873   :  { %2008 = vmatmul.msk.f32.gmra.mxu0 %vm642_vm1, %v1992_v1 }
 0x87b   :  { %2009 = vmatmul.msk.f32.gmra.mxu0 %vm642_vm1, %v1993_v4 }
 0x883   :  { %2010 = vmatmul.msk.f32.gmra.mxu0 %vm642_vm1, %v1994_v5 }
 0x8c8   :  { %v1690_v7 = vpop.f32.mrf.mxu0 }
 0x8c9   :  { %v1691_v60 = vadd.f32 %v1690_v7, %v1612_v59  ;;  %v1793_v7 = vpop.permute.xlu0 %1792 }
 0x8cb   :  { %v1714_v6 = vmul.f32 0.01, %v1691_v60 }
 0x8cd   :  { %v1722_v23 = vmax.f32 %v1691_v60, %v1714_v6 }
 0x8d0   :  { %v1693_v11 = vpop.f32.mrf.mxu0 }
 0x8d1   :  { %v1694_v49 = vadd.f32 %v1693_v11, %v1617_v46  ;;  %v1800_v11 = vpop.permute.xlu1 %1799 }
 0x8d3   :  { %v1715_v2 = vmul.f32 0.01, %v1694_v49 }
 0x8d5   :  { %v1723_v17 = vmax.f32 %v1694_v49, %v1715_v2 }
 0x8d8   :  { %v1696_v21 = vpop.f32.mrf.mxu0 }
 0x8d9   :  { %v1697_v39 = vadd.f32 %v1696_v21, %v1622_v38 }
 0x8db   :  { %v1716_v61 = vmul.f32 0.01, %v1697_v39 }
 0x8dd   :  { %v1724_v16 = vmax.f32 %v1697_v39, %v1716_v61 }
 0x8e0   :  { %v1699_v22 = vpop.f32.mrf.mxu0 }
 0x8e1   :  { %v1700_v33 = vadd.f32 %v1699_v22, %v1627_v15 }
 0x8e3   :  { %v1717_v52 = vmul.f32 0.01, %v1700_v33 }
 0x8e5   :  { %v1725_v3 = vmax.f32 %v1700_v33, %v1717_v52 }
 0x8e8   :  { %v1702_v26 = vpop.f32.mrf.mxu0 }
 0x8e9   :  { %v1703_v25 = vadd.f32 %v1702_v26, %v1632_v8 }
 0x8eb   :  { %v1718_v42 = vmul.f32 0.01, %v1703_v25 }
 0x8ed   :  { %v1726_v0 = vmax.f32 %v1703_v25, %v1718_v42 }
 0x8f0   :  { %v1705_v27 = vpop.f32.mrf.mxu0 }
 0x8f1   :  { %v1706_v10 = vadd.f32 %v1705_v27, %v1637_v24 }
 0x8f3   :  { %v1719_v20 = vmul.f32 0.01, %v1706_v10 }
 0x8f5   :  { %v1727_v53 = vmax.f32 %v1706_v10, %v1719_v20 }
 0x8f8   :  { %v1708_v12 = vpop.f32.mrf.mxu0 }
 0x8f9   :  { %v1709_v18 = vadd.f32 %v1708_v12, %v1642_v14 }
 0x8fb   :  { %v1720_v28 = vmul.f32 0.01, %v1709_v18 }
 0x8fd   :  { %v1728_v45 = vmax.f32 %v1709_v18, %v1720_v28 }
 0x900   :  { %v1711_v9 = vpop.f32.mrf.mxu0 }
 0x901   :  { %v1712_v19 = vadd.f32 %v1711_v9, %v1647_v34 }
 0x903   :  { %v1721_v32 = vmul.f32 0.01, %v1712_v19 }
 0x905   :  { %v1729_v35 = vmax.f32 %v1712_v19, %v1721_v32 }
 0x907   :  { %1760 = vmatpush.msrb.mxu2 %v1729_v35 }
 0x909   :  { %1761 = vmatpush.msrb.mxu2 %v1728_v45 }
 0x90b   :  { %1762 = vmatpush.msrb.mxu2 %v1727_v53 }
 0x90d   :  { %1763 = vmatpush.msrb.mxu2 %v1726_v0 }
 0x90f   :  { %1764 = vmatpush.msrb.mxu2 %v1725_v3 }
 0x911   :  { %1765 = vmatpush.msrb.mxu2 %v1724_v16 }
 0x913   :  { %1766 = vmatpush.msrb.mxu2 %v1723_v17 }
 0x915   :  { %1767 = vmatpush.msrb.mxu2 %v1722_v23 }
 0x916   :  { %2015 = vmatmul.msk.f32.vlgmr.msrb.gmra.mxu2 %vm642_vm1, %v2011_v29 }
 0x91e   :  { %2016 = vmatmul.msk.f32.gmra.mxu2 %vm642_vm1, %v2012_v30 }
 0x999   :  { %v1769_v37 = vpop.f32.mrf.mxu2 }
 0x99a   :  { %v1770_v40 = vadd.f32 %v1769_v37, %v1739_v36 }
 0x99c   :  { %2050 = vtanh.f32 %v1770_v40 }
 0x9a1   :  { %v1772_v41 = vpop.f32.mrf.mxu2 }
 0x9a2   :  { %v2051_v43 = vpop.eup %2050  ;;  %v1773_v47 = vadd.f32 %v1772_v41, %v1744_v44 }
 0x9a3   :  { %v1777_v48 = vmul.f32 1.442695, %v2051_v43  ;;  %v1781_v50 = vrot.slane %v2051_v43, 4 }
 0x9a5   :  { %2052 = vpow2.f32 %v1777_v48  ;;  %v1782_v51 = vadd.f32 %v2051_v43, %v1781_v50 }
 0x9a6   :  { %2054 = vtanh.f32 %v1773_v47 }
 0x9a7   :  { %v1783_v54 = vrot.slane %v1782_v51, 2 }
 0x9a9   :  { %v1784_v55 = vadd.f32 %v1783_v54, %v1782_v51 }
 0x9ab   :  { %v2053_v56 = vpop.eup %2052  ;;  %v1785_v57 = vrot.slane %v1784_v55, 1 }
 0x9ac   :  { %v1779_v58 = vmul.f32 %v2053_v56, %v2937_v31  ;;  %v2055_v62 = vpop.eup %2054 }
 0x9ad   :  { %v1786_v63 = vadd.f32 %v1785_v57, %v1784_v55 }
 0x9ae   :  { %v1780_v1 = vadd.f32 %v2055_v62, %v1779_v58 }
 0x9af   :  { %v1787_v4 = vadd.f32 %v1786_v63, %v2943_v13 }
 0x9b0   :  { %v1788_v5 = vadd.f32 1.0, %v1780_v1 }
 0x9b1   :  { %1804 = vst [vmem:[#allocation4] sm:$0x1] %v1787_v4 }
 0x9b2   :  { %v1795_v31 = vmul.f32 %v1793_v7, %v1788_v5  ;;  %1826 = dma.vmem_to_hbm [thread:$0]  %s1822_s21, 16, %s1824_s24, [#allocation5]  }
 0x9b4   :  { %v1802_v21 = vadd.f32 %v1800_v11, %v1795_v31 }
 0x9b6   :  { %1803 = vst [vmem:[#allocation2] sm:$0xff] %v1802_v21 }
 0x9b7   :  { %1815 = dma.vmem_to_hbm [thread:$0]  %s1811_s7, 128, %s1813_s2, [#allocation3]  }
 0x9b8   :  { %2104 = dma.done.wait [#allocation3], 128  }
 0x9b9   :  { %2105 = vsyncadd [#allocation3], 4294967168 }
 0x9ba   :  { %2106 = dma.done.wait [#allocation5], 16  }
 0x9bb   :  { %2107 = vsyncadd [#allocation5], 4294967280 }
 0x9bc   :  { %1835 = vsyncpa [#allocation3], 1 }
 0x9bd   :  { %1836 = vsyncpa [#allocation5], 1 }

</bundles_post_ra>
